<compile_context>
chip_gen: v7x
topology: tpu7x:2x2x1
jax: 0.10.0
libtpu: 0.0.40
codegen_flags: <defaults>
</compile_context>

<pallas_src>
import functools

import jax
import jax.numpy as jnp
import numpy as np
from jax.experimental import pallas as pl
from jax.experimental.pallas import tpu as pltpu


def _pair(v):
    return (v, v) if isinstance(v, int) else tuple(v)


def _round_up(v, m):
    return (v + m - 1) // m * m


def _choose_tm(m_total, k_tot, cout_p, budget_bytes=20 * 1024 * 1024):
    """Largest M-tile (<=1024, power of two) whose double-buffered in/out tiles
    fit a conservative VMEM budget valid on v5e/v6e/v7x."""
    tm = 1024
    while tm > 8 and (2 * tm * k_tot * 2 + 2 * tm * cout_p * 4) > budget_bytes:
        tm //= 2
    return max(8, min(tm, _round_up(m_total, 8)))


# ----------------------------- kernels ---------------------------------------


def _convt_fused_kernel(x_ref, w_ref, b_ref, out_ref, *, relu, leak):
    """No-BN path: one M-tile of (TM,K)@(K,Cout_p) + bias [+ (Leaky)ReLU]."""
    y = jnp.dot(x_ref[...], w_ref[...], preferred_element_type=jnp.float32)
    y = y + b_ref[...]
    if relu:
        y = jnp.where(y >= 0, y, leak * y) if leak > 0 else jnp.maximum(y, 0.0)
    out_ref[...] = y.astype(out_ref.dtype)


def _convt_stats_kernel(x_ref, w_ref, b_ref, y_ref, stats_ref, *, tm, m_total):
    """BN pass 1: conv + bias for one M-tile, plus per-tile (sum, sumsq) partials."""
    y = jnp.dot(x_ref[...], w_ref[...], preferred_element_type=jnp.float32)
    y = y + b_ref[...]
    y_ref[...] = y
    # Mask rows beyond the true M (ragged last tile) out of the batch statistics.
    row = jax.lax.broadcasted_iota(jnp.int32, (tm, 1), 0) + pl.program_id(0) * tm
    yv = jnp.where(row < m_total, y, 0.0)
    s = jnp.sum(yv, axis=0, keepdims=True)                 # (1, Cout_p)
    ss = jnp.sum(yv * yv, axis=0, keepdims=True)           # (1, Cout_p)
    stats_ref[...] = jnp.concatenate([s, ss], axis=0).reshape(stats_ref.shape)


def _bn_act_kernel(y_ref, scale_ref, shift_ref, out_ref, *, relu, leak):
    """BN pass 2: per-channel affine (folded BN) [+ (Leaky)ReLU] for one M-tile."""
    y = y_ref[...] * scale_ref[...] + shift_ref[...]
    if relu:
        y = jnp.where(y >= 0, y, leak * y) if leak > 0 else jnp.maximum(y, 0.0)
    out_ref[...] = y.astype(out_ref.dtype)


# ----------------------------- wrapper ----------------------------------------


def conv_transpose2d_forward(x, weight, bias, gamma, beta, *, stride=1,
                             padding=1, output_padding=0, dilation=1,
                             relu=False, leak=0.0, bn=False, eps=1e-5,
                             compute_dtype=jnp.bfloat16):
    """x: (N, Cin, H, W) NCHW; weight: (Cin, Cout, KH, KW) (PyTorch layout)."""
    N, Cin, H, W = x.shape
    Cin_w, Cout, KH, KW = weight.shape
    assert Cin == Cin_w
    sH, sW = _pair(stride)
    pH, pW = _pair(padding)
    opH, opW = _pair(output_padding)
    dH, dW = _pair(dilation)

    H_out = (H - 1) * sH - 2 * pH + dH * (KH - 1) + opH + 1
    W_out = (W - 1) * sW - 2 * pW + dW * (KW - 1) + opW + 1
    M = N * H_out * W_out
    K_tot = KH * KW * Cin

    # ---- glue (pure data movement): zero-dilate, pad, im2col with taps folded ----
    x_nhwc = jnp.transpose(x, (0, 2, 3, 1))
    H_up = (H - 1) * sH + 1
    W_up = (W - 1) * sW + 1
    x_up = jnp.zeros((N, H_up, W_up, Cin), x.dtype).at[:, ::sH, ::sW, :].set(x_nhwc)
    plH = dH * (KH - 1) - pH
    plW = dW * (KW - 1) - pW
    # TODO(synk): padding > dilation*(kernel_size-1) would require cropping instead of padding.
    assert plH >= 0 and plW >= 0
    x_pad = jnp.pad(x_up, ((0, 0), (plH, plH + opH), (plW, plW + opW), (0, 0)))
    # TODO(synk): for very large activations, stream shifted windows of x_pad into the
    # kernel via per-tap DMA (memory_space=pl.ANY) instead of materializing the
    # KH*KW-replicated im2col matrix in HBM.
    cols = [
        x_pad[:, kh * dH:kh * dH + H_out, kw * dW:kw * dW + W_out, :].reshape(M, Cin)
        for kh in range(KH) for kw in range(KW)
    ]
    x_cols = jnp.concatenate(cols, axis=-1).astype(compute_dtype)       # (M, K_tot)

    # flipped kernel taps, laid out to match the x_cols tap order (kh, kw, cin)
    w_flip = weight[:, :, ::-1, ::-1]                                   # (Cin, Cout, KH, KW)
    w_cols = jnp.transpose(w_flip, (2, 3, 0, 1)).reshape(K_tot, Cout)

    # lane-dense output: pad Cout up to a multiple of 128
    Cout_p = _round_up(Cout, 128)
    w_cols = jnp.pad(w_cols, ((0, 0), (0, Cout_p - Cout))).astype(compute_dtype)
    b = jnp.zeros((1, Cout_p), jnp.float32)
    if bias is not None:
        b = b.at[0, :Cout].set(bias.astype(jnp.float32))

    # M tiling
    TM = _choose_tm(M, K_tot, Cout_p)
    M_pad = _round_up(M, TM)
    if M_pad != M:
        x_cols = jnp.pad(x_cols, ((0, M_pad - M), (0, 0)))
    n_m = M_pad // TM

    cparams = pltpu.CompilerParams(
        dimension_semantics=("parallel",),          # shards the M axis across TCs on v7x
        vmem_limit_bytes=32 * 1024 * 1024)          # raise v5e's 16 MiB scoped default

    if not bn:
        kern = functools.partial(_convt_fused_kernel, relu=relu, leak=leak)
        out_flat = pl.pallas_call(
            kern,
            out_shape=jax.ShapeDtypeStruct((M_pad, Cout_p), jnp.float32),
            grid_spec=pltpu.PrefetchScalarGridSpec(
                num_scalar_prefetch=0,
                grid=(n_m,),
                in_specs=[
                    pl.BlockSpec((TM, K_tot), lambda m: (m, 0)),
                    pl.BlockSpec((K_tot, Cout_p), lambda m: (0, 0)),   # stays resident
                    pl.BlockSpec((1, Cout_p), lambda m: (0, 0)),
                ],
                out_specs=pl.BlockSpec((TM, Cout_p), lambda m: (m, 0)),
            ),
            compiler_params=cparams,
        )(x_cols, w_cols, b)
    else:
        # Pass 1: conv + bias tiles, plus per-tile (sum, sumsq) channel partials.
        kern = functools.partial(_convt_stats_kernel, tm=TM, m_total=M)
        y_pre, part = pl.pallas_call(
            kern,
            out_shape=(jax.ShapeDtypeStruct((M_pad, Cout_p), jnp.float32),
                       jax.ShapeDtypeStruct((n_m, 2, Cout_p), jnp.float32)),
            grid_spec=pltpu.PrefetchScalarGridSpec(
                num_scalar_prefetch=0,
                grid=(n_m,),
                in_specs=[
                    pl.BlockSpec((TM, K_tot), lambda m: (m, 0)),
                    pl.BlockSpec((K_tot, Cout_p), lambda m: (0, 0)),
                    pl.BlockSpec((1, Cout_p), lambda m: (0, 0)),
                ],
                out_specs=(
                    pl.BlockSpec((TM, Cout_p), lambda m: (m, 0)),
                    pl.BlockSpec((1, 2, Cout_p), lambda m: (m, 0, 0)),
                ),
            ),
            compiler_params=cparams,
        )(x_cols, w_cols, b)

        # Exact PyTorch training-mode batch stats over all N*H_out*W_out positions.
        tot = jnp.sum(part, axis=0)                            # (2, Cout_p)
        mean = tot[0] / M
        var = jnp.maximum(tot[1] / M - mean * mean, 0.0)       # biased variance
        g = jnp.ones((Cout_p,), jnp.float32)
        bt = jnp.zeros((Cout_p,), jnp.float32)
        if gamma is not None:
            g = g.at[:Cout].set(gamma.astype(jnp.float32))
        if beta is not None:
            bt = bt.at[:Cout].set(beta.astype(jnp.float32))
        inv = jax.lax.rsqrt(var + eps)
        scale = (g * inv).reshape(1, Cout_p)
        shift = (bt - mean * g * inv).reshape(1, Cout_p)
        # TODO(synk): BatchNorm2d running_mean/var momentum buffers are training
        # state and are not updated here.

        # Pass 2: folded BN affine + activation, tiled over M.
        kern2 = functools.partial(_bn_act_kernel, relu=relu, leak=leak)
        out_flat = pl.pallas_call(
            kern2,
            out_shape=jax.ShapeDtypeStruct((M_pad, Cout_p), jnp.float32),
            grid_spec=pltpu.PrefetchScalarGridSpec(
                num_scalar_prefetch=0,
                grid=(n_m,),
                in_specs=[
                    pl.BlockSpec((TM, Cout_p), lambda m: (m, 0)),
                    pl.BlockSpec((1, Cout_p), lambda m: (0, 0)),
                    pl.BlockSpec((1, Cout_p), lambda m: (0, 0)),
                ],
                out_specs=pl.BlockSpec((TM, Cout_p), lambda m: (m, 0)),
            ),
            compiler_params=cparams,
        )(y_pre, scale, shift)

    out = out_flat[:M, :Cout].reshape(N, H_out, W_out, Cout)
    return jnp.transpose(out, (0, 3, 1, 2))                    # NCHW


# ----------------------------- reference ---------------------------------------


def reference_forward(x, weight, bias, gamma, beta, *, stride, padding,
                      output_padding, dilation, relu, leak, bn, eps=1e-5):
    """Pure-JAX reference (same semantics as the PyTorch module, f32 HIGHEST)."""
    sH, sW = _pair(stride)
    pH, pW = _pair(padding)
    opH, opW = _pair(output_padding)
    dH, dW = _pair(dilation)
    Cin, Cout, KH, KW = weight.shape
    w_oihw = jnp.transpose(weight[:, :, ::-1, ::-1], (1, 0, 2, 3))
    y = jax.lax.conv_general_dilated(
        x, w_oihw, window_strides=(1, 1),
        padding=((dH * (KH - 1) - pH, dH * (KH - 1) - pH + opH),
                 (dW * (KW - 1) - pW, dW * (KW - 1) - pW + opW)),
        lhs_dilation=(sH, sW), rhs_dilation=(dH, dW),
        dimension_numbers=('NCHW', 'OIHW', 'NCHW'),
        precision=jax.lax.Precision.HIGHEST)
    if bias is not None:
        y = y + bias.reshape(1, Cout, 1, 1)
    if bn:
        mean = jnp.mean(y, axis=(0, 2, 3), keepdims=True)
        var = jnp.mean((y - mean) ** 2, axis=(0, 2, 3), keepdims=True)
        y = (y - mean) * jax.lax.rsqrt(var + eps)
        y = y * gamma.reshape(1, Cout, 1, 1) + beta.reshape(1, Cout, 1, 1)
    if relu:
        y = jnp.where(y >= 0, y, leak * y) if leak > 0 else jnp.maximum(y, 0.0)
    return y


def _bf16_round(a):
    return a.astype(jnp.bfloat16).astype(jnp.float32)


if __name__ == "__main__":
    key = jax.random.PRNGKey(0)
    k1, k2, k3, k4, k5 = jax.random.split(key, 5)

    # Config 1: ConvTranspose2d(4, 8, kernel_size=4, stride=2, padding=1, bias=True)
    # + BatchNorm2d + ReLU — classic 2x upsampling deconv.  W=15 makes M not a
    # multiple of the tile, exercising the masked-stats path across 2 M-tiles.
    N, Cin, Cout, H, W = 2, 4, 8, 16, 15
    K, stride, padding, output_padding, dilation = 4, 2, 1, 0, 1
    x = jax.random.normal(k1, (N, Cin, H, W), jnp.float32)
    weight = 0.02 * jax.random.normal(k2, (Cin, Cout, K, K), jnp.float32)
    bias = jnp.zeros((Cout,), jnp.float32)          # PyTorch init: constant 0
    gamma = jnp.ones((Cout,), jnp.float32)
    beta = jnp.zeros((Cout,), jnp.float32)

    out = conv_transpose2d_forward(
        x, weight, bias, gamma, beta, stride=stride, padding=padding,
        output_padding=output_padding, dilation=dilation,
        relu=True, leak=0.0, bn=True)
    out = jax.block_until_ready(out)

    H_out = (H - 1) * stride - 2 * padding + dilation * (K - 1) + output_padding + 1
    W_out = (W - 1) * stride - 2 * padding + dilation * (K - 1) + output_padding + 1
    assert out.shape == (N, Cout, H_out, W_out), out.shape

    # The kernel computes in bf16 (f32 MXU accumulation); compare against the f32
    # reference fed the same bf16-quantized operands so the check isolates kernel
    # structure (taps, shifts, BN, activation) from the intended compute dtype.
    ref = reference_forward(
        _bf16_round(x), _bf16_round(weight), bias, gamma, beta, stride=stride,
        padding=padding, output_padding=output_padding, dilation=dilation,
        relu=True, leak=0.0, bn=True)
    np.testing.assert_allclose(np.asarray(out), np.asarray(ref), atol=2e-3, rtol=2e-3)

    # Config 2: stride-1 ConvTranspose2d(4, 8, kernel_size=3, padding=1) with a
    # nonzero bias and LeakyReLU, no BN — exercises the single-pass fused kernel.
    N2, H2, W2, K2 = 2, 8, 8, 3
    x2 = jax.random.normal(k3, (N2, Cin, H2, W2), jnp.float32)
    w2 = 0.02 * jax.random.normal(k4, (Cin, Cout, K2, K2), jnp.float32)
    b2 = 0.1 * jax.random.normal(k5, (Cout,), jnp.float32)
    out2 = conv_transpose2d_forward(
        x2, w2, b2, None, None, stride=1, padding=1, output_padding=0,
        dilation=1, relu=True, leak=0.1, bn=False)
    out2 = jax.block_until_ready(out2)
    ref2 = reference_forward(
        _bf16_round(x2), _bf16_round(w2), b2, None, None, stride=1, padding=1,
        output_padding=0, dilation=1, relu=True, leak=0.1, bn=False)
    np.testing.assert_allclose(np.asarray(out2), np.asarray(ref2), atol=2e-3, rtol=2e-3)

    print("KERNEL_OK")
</pallas_src>

<mosaic_0001>
module attributes {stable_mosaic.version = 11 : i64} {
  func.func @_convt_stats_kernel(%arg0: i32, %arg1: memref<1024x64xbf16, #tpu.memory_space<vmem>>, %arg2: memref<64x128xbf16, #tpu.memory_space<vmem>>, %arg3: memref<1x128xf32, #tpu.memory_space<vmem>>, %arg4: memref<1024x128xf32, #tpu.memory_space<vmem>>, %arg5: memref<1x2x128xf32, #tpu.memory_space<vmem>>) attributes {dimension_semantics = [#tpu.dimension_semantics<parallel>], iteration_bounds = array<i64: 2>, scalar_prefetch = 0 : i64, scratch_operands = 0 : i64, tpu.core_type = #tpu.core_type<tc>, window_params = [{transform_indices = @transform_0, window_bounds = array<i64: 1024, 64>}, {pipeline_mode = #tpu.pipeline_mode<synchronous>, transform_indices = @transform_1, window_bounds = array<i64: 64, 128>}, {pipeline_mode = #tpu.pipeline_mode<synchronous>, transform_indices = @transform_2, window_bounds = array<i64: 1, 128>}, {transform_indices = @transform_3, window_bounds = array<i64: 1024, 128>}, {transform_indices = @transform_4, window_bounds = array<i64: 1, 2, 128>}]} {
    %c0 = arith.constant 0 : index
    %c0_0 = arith.constant 0 : index
    %0 = vector.load %arg1[%c0, %c0_0] : memref<1024x64xbf16, #tpu.memory_space<vmem>>, vector<1024x64xbf16>
    %c0_1 = arith.constant 0 : index
    %c0_2 = arith.constant 0 : index
    %1 = vector.load %arg2[%c0_1, %c0_2] : memref<64x128xbf16, #tpu.memory_space<vmem>>, vector<64x128xbf16>
    %cst = arith.constant dense<0.000000e+00> : vector<1024x128xf32>
    %2 = tpu.matmul %0, %1, %cst {dimension_numbers = #tpu.dot_dimension_numbers<[1], [0], [0], [1], [0, 0, 1, 1], [], []>} : vector<1024x64xbf16>, vector<64x128xbf16>, vector<1024x128xf32> -> vector<1024x128xf32>
    %c0_3 = arith.constant 0 : index
    %c0_4 = arith.constant 0 : index
    %3 = vector.load %arg3[%c0_3, %c0_4] : memref<1x128xf32, #tpu.memory_space<vmem>>, vector<1x128xf32>
    %4 = vector.broadcast %3 : vector<1x128xf32> to vector<1024x128xf32>
    %5 = arith.addf %2, %4 : vector<1024x128xf32>
    %c0_5 = arith.constant 0 : index
    %c0_6 = arith.constant 0 : index
    %6 = vector.load %arg4[%c0_5, %c0_6] : memref<1024x128xf32, #tpu.memory_space<vmem>>, vector<1024x128xf32>
    tpu.vector_store %arg4[%c0_5, %c0_6], %5 {strides = array<i32>} : memref<1024x128xf32, #tpu.memory_space<vmem>>, vector<1024x128xf32>,
    %7 = tpu.iota {dimensions = array<i32: 0>} : vector<1024x1xi32>
    %c1024_i32 = arith.constant 1024 : i32
    %8 = arith.muli %arg0, %c1024_i32 : i32
    %9 = vector.broadcast %8 : i32 to vector<1024x1xi32>
    %10 = arith.addi %7, %9 : vector<1024x1xi32>
    %c1920_i32 = arith.constant 1920 : i32
    %11 = vector.broadcast %c1920_i32 : i32 to vector<1024x1xi32>
    %12 = arith.cmpi slt, %10, %11 : vector<1024x1xi32>
    %cst_7 = arith.constant 0.000000e+00 : f32
    %13 = vector.shape_cast %12 : vector<1024x1xi1> to vector<1024x1xi1>
    %14 = vector.broadcast %13 : vector<1024x1xi1> to vector<1024x128xi1>
    %15 = vector.broadcast %cst_7 : f32 to vector<1024x128xf32>
    %16 = arith.select %14, %5, %15 : vector<1024x128xi1>, vector<1024x128xf32>
    %cst_8 = arith.constant dense<0.000000e+00> : vector<128xf32>
    %17 = vector.multi_reduction <add>, %16, %cst_8 [0] : vector<1024x128xf32> to vector<128xf32>
    %18 = vector.shape_cast %17 : vector<128xf32> to vector<1x128xf32>
    %19 = arith.mulf %16, %16 : vector<1024x128xf32>
    %cst_9 = arith.constant dense<0.000000e+00> : vector<128xf32>
    %20 = vector.multi_reduction <add>, %19, %cst_9 [0] : vector<1024x128xf32> to vector<128xf32>
    %21 = vector.shape_cast %20 : vector<128xf32> to vector<1x128xf32>
    %22 = tpu.concatenate %18, %21 in 0 : vector<1x128xf32>, vector<1x128xf32> -> vector<2x128xf32>
    %23 = vector.shape_cast %22 : vector<2x128xf32> to vector<1x2x128xf32>
    %c0_10 = arith.constant 0 : index
    %c0_11 = arith.constant 0 : index
    %c0_12 = arith.constant 0 : index
    %24 = vector.load %arg5[%c0_10, %c0_11, %c0_12] : memref<1x2x128xf32, #tpu.memory_space<vmem>>, vector<1x2x128xf32>
    tpu.vector_store %arg5[%c0_10, %c0_11, %c0_12], %23 {strides = array<i32>} : memref<1x2x128xf32, #tpu.memory_space<vmem>>, vector<1x2x128xf32>,
    return
  }
  func.func @transform_0(%arg0: i32) -> (i32, i32) {
    %c0_i32 = arith.constant 0 : i32
    %c0_i32_0 = arith.constant 0 : i32
    return %arg0, %c0_i32 : i32, i32
  }
  func.func @transform_1(%arg0: i32) -> (i32, i32) {
    %c0_i32 = arith.constant 0 : i32
    %c0_i32_0 = arith.constant 0 : i32
    %c0_i32_1 = arith.constant 0 : i32
    return %c0_i32, %c0_i32_0 : i32, i32
  }
  func.func @transform_2(%arg0: i32) -> (i32, i32) {
    %c0_i32 = arith.constant 0 : i32
    %c0_i32_0 = arith.constant 0 : i32
    %c0_i32_1 = arith.constant 0 : i32
    return %c0_i32, %c0_i32_0 : i32, i32
  }
  func.func @transform_3(%arg0: i32) -> (i32, i32) {
    %c0_i32 = arith.constant 0 : i32
    %c0_i32_0 = arith.constant 0 : i32
    return %arg0, %c0_i32 : i32, i32
  }
  func.func @transform_4(%arg0: i32) -> (i32, i32, i32) {
    %c0_i32 = arith.constant 0 : i32
    %c0_i32_0 = arith.constant 0 : i32
    %c0_i32_1 = arith.constant 0 : i32
    return %arg0, %c0_i32, %c0_i32_0 : i32, i32, i32
  }
}

</mosaic_0001>

<bundles_post_ra>
// kernel: tpu_custom_call.1
= control target key start
LH: loop header
LB: loop body
LE: loop exit
PB: predicated region body
PF: predicated region fallthrough
CT: control target
= control target key end

     0   :  { %10 = vsyncpa [#allocation3], 0  ;;  %s4964_s0 = inlined_call_operand.vmem [shape: bf16[2048,64], index: 0, kind: input, shape index: {}]   ;;  %s4965_s1 = inlined_call_operand.vmem [shape: bf16[64,128], index: 1, kind: input, shape index: {}]   ;;  %s4966_s2 = inlined_call_operand.vmem [shape: f32[1,128], index: 2, kind: input, shape index: {}]   ;;  %s4967_s3 = inlined_call_operand.hbm [shape: f32[2048,128], index: 3, kind: output, shape index: {0}]   ;;  %s4968_s4 = inlined_call_operand.hbm [shape: f32[2,2,128], index: 4, kind: output, shape index: {1}]  }
   0x1   :  { %12 = vsyncpa [#allocation3 + $0x1], 0 }
   0x2   :  { %13 = vsyncpa [#allocation5], 0 }
   0x3   :  { %15 = vsyncpa [#allocation5 + $0x1], 0  ;;  %s3479_s15 = smov 0   ;;  %s3481_s16 = smov 0  }
   0x4   :  { %s3483_s17 = smov 0   ;;  %s3485_s18 = smov 0  }
   0x5 LB: > { %s3500_s19 = sadd.s32 4294967295, %s3448_s18   ;;  %s2858_s20 = sadd.s32 4294967294, %s3448_s18   ;;  %s3448_s18 = sphi %s3485_s18, %s4998_s18   ;;  %s3444_s17 = sphi %s3483_s17, %s4997_s17   ;;  %s3440_s16 = sphi %s3481_s16, %s4996_s16   ;;  %s3436_s15 = sphi %s3479_s15, %s4995_s15  }
   0x6   : > { %s3504_s21 = sadd.s32 1, %s3448_s18   ;;  %s96_s22 = sadd.s32 1, %s3444_s17 }
   0x7   : > { %s93_s23 = ssub.s32 %s3448_s18, %s3504_s21  ;;  %p106_p0 = scmp.ne.s32.totalorder %s3444_s17, %s3440_s16 }
   0x8   : > { %p94_p1 = scmp.eq.s32.totalorder %s93_s23, 0  ;;  %p107_p2 = scmp.eq.s32.totalorder %s3500_s19, 1 }
   0x9   : > { %p112_p3 = scmp.ne.s32.totalorder %s3440_s16, %s3436_s15  ;;  %p113_p4 = scmp.eq.s32.totalorder %s2858_s20, 1 }
   0xa   : > { %s3515_s24 = scalar_select %p94_p1, %s3444_s17, %s96_s22  }
   0xb   : > { %p3517_p5 = por %p107_p2, %p106_p0  ;;  %p3521_p6 = por %p113_p4, %p112_p3 }
   0xc   : > { %p2861_p7 = scmp.ge.s32.totalorder %s3448_s18, 1  ;;  %p172_p8 = scmp.lt.s32.totalorder %s3448_s18, 3 }
   0xe   : > { %p173_p9 = pnand %p2861_p7, %p172_p8 }
  0x10   : > { %176 = sbr.rel (%p173_p9) target bundleno = 554 (0x22a), region = 32 }
  0x17   : > { %v3266_v0 = vld [vmem:[%s4965_s1] sm:$0xff]   ;;  %s2864_s29 = sshll.u32 %s3500_s19, 7  ;;  %v3267_v1 = vld [vmem:[%s4965_s1 + $0x8] sm:$0xff]   ;;  %v3268_v2 = vld [vmem:[%s4965_s1 + $0x10] sm:$0xff]   ;;  %vm698_vm0 = vcmask 523264   ;;  %s2999_s14 = sshll.u32 %s3500_s19, 10 }
  0x18   : > { %p204_p10 = scmp.lt.s32.totalorder %s2864_s29, 255  ;;  %3076 = vmatprep.subr.bf16.mxu0 %v3266_v0  ;;  %3212 = vmatprep.subr.bf16.mxu1 %v3266_v0  ;;  %v3269_v4 = vld [vmem:[%s4965_s1 + $0x18] sm:$0xff]   ;;  %s3679_s20 = sand.u32 1, %s3440_s16  }
  0x19   : > { %3077 = vmatpush3.bf16.msra.mxu0 %v3266_v0  ;;  %3216 = vmatpush3.bf16.msra.mxu1 %v3266_v0  ;;  %s2862_s22 = sshll.u32 %s3679_s20, 10  ;;  %s3007_s5 = sshll.u32 %s3500_s19, 14 }
  0x1a   : > { %s5000_s29 = smov (!%p204_p10, %s2864_s29), 255  ;;  %3078 = vmatprep.subr.bf16.mxu0 %v3267_v1  ;;  %3213 = vmatprep.subr.bf16.mxu1 %v3267_v1  ;;  %s3707_s28 = scalar_lea.vmem [#allocation2], %s2862_s22 }
  0x1b   : > { %s2865_s8 = sshll.u32 %s5000_s29, 2  ;;  %s2751_s6 = sshll.u32 %s3707_s28, 4  ;;  %s4780_s6 = int_to_ptr.vmem [resolvable:$true] %s2751_s6 }
  0x1c   : > { %s3540_s11 = scalar_lea.vmem %s4964_s0, %s2865_s8  ;;  %s4778_s9 = scalar_lea.hbm %s4967_s3, %s3007_s5 }
  0x1d   : > { %3079 = vmatpush3.bf16.msra.mxu0 %v3267_v1  ;;  %v3270_v3 = vld [vmem:[%s3540_s11] sm:$0xff]   ;;  %3217 = vmatpush3.bf16.msra.mxu1 %v3267_v1  ;;  %v3271_v5 = vld [vmem:[%s3540_s11 + $0x8] sm:$0xff]   ;;  %v3272_v6 = vld [vmem:[%s3540_s11 + $0x10] sm:$0xff]   ;;  %s2733_s10 = scalar_lea.sflag [#allocation3], %s3679_s20  ;;  %s3450_s12 = smov [#allocation2]  }
  0x1e   : > { %3080 = vmatprep.subr.bf16.mxu0 %v3268_v2  ;;  %3214 = vmatprep.subr.bf16.mxu1 %v3268_v2  ;;  %v3273_v7 = vld [vmem:[%s3540_s11 + $0x18] sm:$0xff]   ;;  %v3274_v8 = vld [vmem:[%s3540_s11 + $0x20] sm:$0xff]   ;;  %v3275_v9 = vld [vmem:[%s3540_s11 + $0x28] sm:$0xff]   ;;  %s3358_s13 = sshll.u32 %s3450_s12, 4  ;;  %s3359_s13 = int_to_ptr.vmem [resolvable:$false] %s3358_s13 }
  0x1f   : > { %3084 = vmatprep.mubr.msk.bf16.mxu0 %vm698_vm0, %v3270_v3  ;;  %v3276_v10 = vld [vmem:[%s3540_s11 + $0x30] sm:$0xff]   ;;  %v3277_v11 = vld [vmem:[%s3540_s11 + $0x38] sm:$0xff]   ;;  %v3278_v12 = vld [vmem:[%s3540_s11 + $0x40] sm:$0xff]   ;;  %p3361_p0 = scmp.lt.s32.totalorder %s4780_s6, %s3359_s13 }
  0x20   : > { %v3302_v13 = vld [vmem:[%s3540_s11 + $0x100] sm:$0xff]   ;;  %v3303_v14 = vld [vmem:[%s3540_s11 + $0x108] sm:$0xff]   ;;  %v3304_v15 = vld [vmem:[%s3540_s11 + $0x110] sm:$0xff]  }
  0x21   : > { %3081 = vmatpush3.bf16.msra.mxu0 %v3268_v2  ;;  %3218 = vmatpush3.bf16.msra.mxu1 %v3268_v2  ;;  %v3279_v16 = vld [vmem:[%s3540_s11 + $0x48] sm:$0xff]   ;;  %v3280_v17 = vld [vmem:[%s3540_s11 + $0x50] sm:$0xff]   ;;  %v3305_v18 = vld [vmem:[%s3540_s11 + $0x118] sm:$0xff]  }
  0x22   : > { %3082 = vmatprep.subr.bf16.mxu0 %v3269_v4  ;;  %3215 = vmatprep.subr.bf16.mxu1 %v3269_v4  ;;  %v3306_v19 = vld [vmem:[%s3540_s11 + $0x120] sm:$0xff]   ;;  %v3281_v20 = vld [vmem:[%s3540_s11 + $0x58] sm:$0xff]   ;;  %v3307_v22 = vld [vmem:[%s3540_s11 + $0x128] sm:$0xff]  }
  0x23   : > { %3148 = vmatprep.mubr.msk.bf16.mxu1 %vm698_vm0, %v3302_v13  ;;  %v3282_v21 = vld [vmem:[%s3540_s11 + $0x60] sm:$0xff]   ;;  %v3308_v23 = vld [vmem:[%s3540_s11 + $0x130] sm:$0xff]   ;;  %v3283_v24 = vld [vmem:[%s3540_s11 + $0x68] sm:$0xff]  }
  0x24   : > { %v3309_v25 = vld [vmem:[%s3540_s11 + $0x138] sm:$0xff]   ;;  %v3284_v26 = vld [vmem:[%s3540_s11 + $0x70] sm:$0xff]   ;;  %v3310_v27 = vld [vmem:[%s3540_s11 + $0x140] sm:$0xff]  }
  0x25   : > { %3083 = vmatpush3.bf16.msra.mxu0 %v3269_v4  ;;  %3219 = vmatpush3.bf16.msra.mxu1 %v3269_v4  ;;  %v3285_v28 = vld [vmem:[%s3540_s11 + $0x78] sm:$0xff]   ;;  %v3311_v29 = vld [vmem:[%s3540_s11 + $0x148] sm:$0xff]   ;;  %v3286_v30 = vld [vmem:[%s3540_s11 + $0x80] sm:$0xff]   ;;  %v1564_v4 = vlaneseq }
  0x26   : > { %v3312_v31 = vld [vmem:[%s3540_s11 + $0x150] sm:$0xff]   ;;  %v3287_v32 = vld [vmem:[%s3540_s11 + $0x88] sm:$0xff]   ;;  %v3313_v33 = vld [vmem:[%s3540_s11 + $0x158] sm:$0xff]  }
  0x27   : > { %v3288_v34 = vld [vmem:[%s3540_s11 + $0x90] sm:$0xff]   ;;  %v3314_v35 = vld [vmem:[%s3540_s11 + $0x160] sm:$0xff]   ;;  %v3289_v36 = vld [vmem:[%s3540_s11 + $0x98] sm:$0xff]  }
  0x28   : > { %3085 = vmatmul.mubr.msk.bf16.vlgmr.msra.gmra.mrb[0].mxu0 %vm698_vm0, %v3271_v5  ;;  %3149 = vmatmul.mubr.msk.bf16.vlgmr.msra.gmra.mrb[0].mxu1 %vm698_vm0, %v3303_v14  ;;  %v3315_v37 = vld [vmem:[%s3540_s11 + $0x168] sm:$0xff]   ;;  %v3290_v38 = vld [vmem:[%s3540_s11 + $0xa0] sm:$0xff]   ;;  %v3316_v39 = vld [vmem:[%s3540_s11 + $0x170] sm:$0xff]   ;;  %v3674_v5 = vshrl.u32 %v1564_v4, 7 }
  0x29   : > { %3088 = vmatprep.mubr.msk.bf16.mxu0 %vm698_vm0, %v3272_v6  ;;  %3152 = vmatprep.mubr.msk.bf16.mxu1 %vm698_vm0, %v3304_v15  ;;  %v3291_v40 = vld [vmem:[%s3540_s11 + $0xa8] sm:$0xff]   ;;  %v3317_v41 = vld [vmem:[%s3540_s11 + $0x178] sm:$0xff]   ;;  %v3292_v42 = vld [vmem:[%s3540_s11 + $0xb0] sm:$0xff]   ;;  %v3676_v6 = vstv %s2999_s14  ;;  %s3360_s14 = scalar_lea.vmem %s3359_s13, 32768 }
  0x2a   : > { %v3318_v43 = vld [vmem:[%s3540_s11 + $0x180] sm:$0xff]   ;;  %v3293_v44 = vld [vmem:[%s3540_s11 + $0xb8] sm:$0xff]   ;;  %v3319_v45 = vld [vmem:[%s3540_s11 + $0x188] sm:$0xff]  }
  0x2b   : > { %v3294_v46 = vld [vmem:[%s3540_s11 + $0xc0] sm:$0xff]   ;;  %v3320_v47 = vld [vmem:[%s3540_s11 + $0x190] sm:$0xff]   ;;  %v3295_v48 = vld [vmem:[%s3540_s11 + $0xc8] sm:$0xff]  }
  0x2c   : > { %v3321_v49 = vld [vmem:[%s3540_s11 + $0x198] sm:$0xff]   ;;  %v3296_v50 = vld [vmem:[%s3540_s11 + $0xd0] sm:$0xff]   ;;  %v3322_v51 = vld [vmem:[%s3540_s11 + $0x1a0] sm:$0xff]  }
  0x2d   : > { %v3297_v52 = vld [vmem:[%s3540_s11 + $0xd8] sm:$0xff]   ;;  %v3323_v53 = vld [vmem:[%s3540_s11 + $0x1a8] sm:$0xff]   ;;  %v3298_v54 = vld [vmem:[%s3540_s11 + $0xe0] sm:$0xff]  }
  0x2e   : > { %v3324_v55 = vld [vmem:[%s3540_s11 + $0x1b0] sm:$0xff]   ;;  %v3299_v56 = vld [vmem:[%s3540_s11 + $0xe8] sm:$0xff]   ;;  %v3325_v57 = vld [vmem:[%s3540_s11 + $0x1b8] sm:$0xff]  }
  0x2f   : > { %v3300_v58 = vld [vmem:[%s3540_s11 + $0xf0] sm:$0xff]   ;;  %v3326_v59 = vld [vmem:[%s3540_s11 + $0x1c0] sm:$0xff]   ;;  %v3301_v60 = vld [vmem:[%s3540_s11 + $0xf8] sm:$0xff]  }
  0x30   : > { %3089 = vmatmul.mubr.msk.bf16.gmra.mrb[4].mxu0 %vm698_vm0, %v3273_v7  ;;  %3153 = vmatmul.mubr.msk.bf16.gmra.mrb[4].mxu1 %vm698_vm0, %v3305_v18  ;;  %v3327_v61 = vld [vmem:[%s3540_s11 + $0x1c8] sm:$0xff]   ;;  %v3328_v62 = vld [vmem:[%s3540_s11 + $0x1d0] sm:$0xff]   ;;  %v3329_v63 = vld [vmem:[%s3540_s11 + $0x1d8] sm:$0xff]   ;;  %v1567_v7 = vadd.s32 16, %v3674_v5 }
  0x31   : > { %3092 = vmatprep.mubr.msk.bf16.mxu0 %vm698_vm0, %v3274_v8  ;;  %3156 = vmatprep.mubr.msk.bf16.mxu1 %vm698_vm0, %v3306_v19  ;;  %v3330_v0 = vld [vmem:[%s3540_s11 + $0x1e0] sm:$0xff]   ;;  %v3331_v1 = vld [vmem:[%s3540_s11 + $0x1e8] sm:$0xff]   ;;  %v3332_v2 = vld [vmem:[%s3540_s11 + $0x1f0] sm:$0xff]   ;;  %v1566_v8 = vadd.s32 8, %v3674_v5  ;;  %v1570_v19 = vadd.s32 40, %v3674_v5 }
  0x32   : > { %v3333_v3 = vld [vmem:[%s3540_s11 + $0x1f8] sm:$0xff]   ;;  %v3692_v13 = vld [vmem:[%s4966_s2] ss:$0 sm:$0xff]  ;;  %v1697_v14 = vadd.s32 %v3676_v6, %v1567_v7  ;;  %s3354_s11 = scalar_lea.vmem %s4780_s6, 16384 }
  0x33   : > { %v1696_v15 = vadd.s32 %v3676_v6, %v1566_v8  ;;  %p3355_p11 = scmp.ne.s32.totalorder %s4780_s6, %s3354_s11  ;;  %p3362_p1 = scmp.lt.s32.totalorder %s3360_s14, %s3354_s11 }
  0x34   : > { %vm1825_vm2 = vcmp.lt.s32.totalorder %v1697_v14, 1920 }
  0x35   : > { %vm1824_vm3 = vcmp.lt.s32.totalorder %v1696_v15, 1920  ;;  %p3356_p12 = pnand %p3355_p11, %p3517_p5  ;;  %p3363_p2 = por %p3362_p1, %p3361_p0 }
  0x37   : > { %p3357_p13 = pneg %p3356_p12 }
  0x38   : > { %3093 = vmatmul.mubr.msk.bf16.gmra.mrb[8].mxu0 %vm698_vm0, %v3275_v9  ;;  %3157 = vmatmul.mubr.msk.bf16.gmra.mrb[8].mxu1 %vm698_vm0, %v3307_v22  ;;  %v1695_v9 = vadd.s32 %v3676_v6, %v3674_v5 }
  0x39   : > { %3096 = vmatprep.mubr.msk.bf16.mxu0 %vm698_vm0, %v3276_v10  ;;  %3160 = vmatprep.mubr.msk.bf16.mxu1 %vm698_vm0, %v3308_v23  ;;  %v1568_v10 = vadd.s32 24, %v3674_v5  ;;  %p3364_p3 = pnand %p3363_p2, %p3357_p13 }
  0x3a   : > { %vm1823_vm1 = vcmp.lt.s32.totalorder %v1695_v9, 1920 }
  0x3b   : > { %v1698_v18 = vadd.s32 %v3676_v6, %v1568_v10 }
  0x3d   : > { %vm1826_vm4 = vcmp.lt.s32.totalorder %v1698_v18, 1920  ;;  %v1581_v18 = vadd.s32 128, %v3674_v5 }
  0x40   : > { %3097 = vmatmul.mubr.msk.bf16.gmra.mrb[12].mxu0 %vm698_vm0, %v3277_v11  ;;  %3161 = vmatmul.mubr.msk.bf16.gmra.mrb[12].mxu1 %vm698_vm0, %v3309_v25  ;;  %v1571_v11 = vadd.s32 48, %v3674_v5 }
  0x41   : > { %3100 = vmatprep.mubr.msk.bf16.mxu0 %vm698_vm0, %v3278_v12  ;;  %3164 = vmatprep.mubr.msk.bf16.mxu1 %vm698_vm0, %v3310_v27  ;;  %v1569_v12 = vadd.s32 32, %v3674_v5  ;;  %v1573_v27 = vadd.s32 64, %v3674_v5 }
  0x42   : > { %v3701_v22 = vadd.s32 %v3676_v6, %v1571_v11 }
  0x43   : > { %v1699_v23 = vadd.s32 %v3676_v6, %v1569_v12 }
  0x44   : > { %vm1829_vm5 = vcmp.lt.s32.totalorder %v3701_v22, 1920 }
  0x45   : > { %vm1827_vm6 = vcmp.lt.s32.totalorder %v1699_v23, 1920 }
  0x48   : > { %3101 = vmatmul.mubr.msk.bf16.gmra.mrb[16].mxu0 %vm698_vm0, %v3279_v16  ;;  %3165 = vmatmul.mubr.msk.bf16.gmra.mrb[16].mxu1 %vm698_vm0, %v3311_v29  ;;  %v1572_v16 = vadd.s32 56, %v3674_v5 }
  0x49   : > { %3104 = vmatprep.mubr.msk.bf16.mxu0 %vm698_vm0, %v3280_v17  ;;  %3168 = vmatprep.mubr.msk.bf16.mxu1 %vm698_vm0, %v3312_v31 }
  0x50   : > { %3105 = vmatmul.mubr.msk.bf16.gmra.mrb[20].mxu0 %vm698_vm0, %v3281_v20  ;;  %3169 = vmatmul.mubr.msk.bf16.gmra.mrb[20].mxu1 %vm698_vm0, %v3313_v33  ;;  %v1700_v33 = vadd.s32 %v3676_v6, %v1570_v19 }
  0x51   : > { %3108 = vmatprep.mubr.msk.bf16.mxu0 %vm698_vm0, %v3282_v21  ;;  %3172 = vmatprep.mubr.msk.bf16.mxu1 %vm698_vm0, %v3314_v35 }
  0x52   : > { %vm1828_vm8 = vcmp.lt.s32.totalorder %v1700_v33, 1920 }
  0x58   : > { %3109 = vmatmul.mubr.msk.bf16.gmra.mrb[24].mxu0 %vm698_vm0, %v3283_v24  ;;  %3173 = vmatmul.mubr.msk.bf16.gmra.mrb[24].mxu1 %vm698_vm0, %v3315_v37  ;;  %v1575_v24 = vadd.s32 80, %v3674_v5 }
  0x59   : > { %3112 = vmatprep.mubr.msk.bf16.mxu0 %vm698_vm0, %v3284_v26  ;;  %3176 = vmatprep.mubr.msk.bf16.mxu1 %vm698_vm0, %v3316_v39  ;;  %v1574_v39 = vadd.s32 72, %v3674_v5 }
  0x5a   : > { %v3720_v35 = vadd.s32 %v3676_v6, %v1575_v24 }
  0x5c   : > { %vm1833_vm9 = vcmp.lt.s32.totalorder %v3720_v35, 1920 }
  0x60   : > { %3113 = vmatmul.mubr.msk.bf16.gmra.mrb[28].mxu0 %vm698_vm0, %v3285_v28  ;;  %3177 = vmatmul.mubr.msk.bf16.gmra.mrb[28].mxu1 %vm698_vm0, %v3317_v41 }
  0x61   : > { %3116 = vmatprep.mubr.msk.bf16.mxu0 %vm698_vm0, %v3286_v30  ;;  %3180 = vmatprep.mubr.msk.bf16.mxu1 %vm698_vm0, %v3318_v43  ;;  %v1702_v30 = vadd.s32 %v3676_v6, %v1572_v16 }
  0x63   : > { %vm1830_vm7 = vcmp.lt.s32.totalorder %v1702_v30, 1920 }
  0x68   : > { %3117 = vmatmul.mubr.msk.bf16.gmra.mrb[32].mxu0 %vm698_vm0, %v3287_v32  ;;  %3181 = vmatmul.mubr.msk.bf16.gmra.mrb[32].mxu1 %vm698_vm0, %v3319_v45 }
  0x69   : > { %3120 = vmatprep.mubr.msk.bf16.mxu0 %vm698_vm0, %v3288_v34  ;;  %3184 = vmatprep.mubr.msk.bf16.mxu1 %vm698_vm0, %v3320_v47  ;;  %v1576_v34 = vadd.s32 88, %v3674_v5 }
  0x6b   : > { %v3728_v45 = vadd.s32 %v3676_v6, %v1576_v34 }
  0x6d   : > { %vm1834_vm11 = vcmp.lt.s32.totalorder %v3728_v45, 1920 }
  0x70   : > { %3121 = vmatmul.mubr.msk.bf16.gmra.mrb[36].mxu0 %vm698_vm0, %v3289_v36  ;;  %3185 = vmatmul.mubr.msk.bf16.gmra.mrb[36].mxu1 %vm698_vm0, %v3321_v49 }
  0x71   : > { %3124 = vmatprep.mubr.msk.bf16.mxu0 %vm698_vm0, %v3290_v38  ;;  %3188 = vmatprep.mubr.msk.bf16.mxu1 %vm698_vm0, %v3322_v51  ;;  %v3724_v38 = vadd.s32 %v3676_v6, %v1573_v27  ;;  %v1584_v27 = vadd.s32 152, %v3674_v5 }
  0x73   : > { %vm1831_vm10 = vcmp.lt.s32.totalorder %v3724_v38, 1920 }
  0x78   : > { %3125 = vmatmul.mubr.msk.bf16.gmra.mrb[40].mxu0 %vm698_vm0, %v3291_v40  ;;  %3189 = vmatmul.mubr.msk.bf16.gmra.mrb[40].mxu1 %vm698_vm0, %v3323_v53 }
  0x79   : > { %3128 = vmatprep.mubr.msk.bf16.mxu0 %vm698_vm0, %v3292_v42  ;;  %3192 = vmatprep.mubr.msk.bf16.mxu1 %vm698_vm0, %v3324_v55  ;;  %v1579_v55 = vadd.s32 112, %v3674_v5 }
  0x7b   : > { %v3756_v9 = vadd.s32 %v3676_v6, %v1579_v55 }
  0x7d   : > { %vm1837_vm14 = vcmp.lt.s32.totalorder %v3756_v9, 1920 }
  0x80   : > { %3129 = vmatmul.mubr.msk.bf16.gmra.mrb[44].mxu0 %vm698_vm0, %v3293_v44  ;;  %3193 = vmatmul.mubr.msk.bf16.gmra.mrb[44].mxu1 %vm698_vm0, %v3325_v57 }
  0x81   : > { %3132 = vmatprep.mubr.msk.bf16.mxu0 %vm698_vm0, %v3294_v46  ;;  %3196 = vmatprep.mubr.msk.bf16.mxu1 %vm698_vm0, %v3326_v59  ;;  %v1577_v46 = vadd.s32 96, %v3674_v5 }
  0x83   : > { %v3748_v4 = vadd.s32 %v3676_v6, %v1577_v46  ;;  %v1587_v46 = vadd.s32 176, %v3674_v5 }
  0x85   : > { %vm1835_vm13 = vcmp.lt.s32.totalorder %v3748_v4, 1920 }
  0x88   : > { %3133 = vmatmul.mubr.msk.bf16.gmra.mrb[48].mxu0 %vm698_vm0, %v3295_v48  ;;  %3197 = vmatmul.mubr.msk.bf16.gmra.mrb[48].mxu1 %vm698_vm0, %v3327_v61 }
  0x89   : > { %3136 = vmatprep.mubr.msk.bf16.mxu0 %vm698_vm0, %v3296_v50  ;;  %3200 = vmatprep.mubr.msk.bf16.mxu1 %vm698_vm0, %v3328_v62 }
  0x90   : > { %3137 = vmatmul.mubr.msk.bf16.gmra.mrb[52].mxu0 %vm698_vm0, %v3297_v52  ;;  %3201 = vmatmul.mubr.msk.bf16.gmra.mrb[52].mxu1 %vm698_vm0, %v3329_v63  ;;  %v1580_v63 = vadd.s32 120, %v3674_v5 }
  0x91   : > { %3140 = vmatprep.mubr.msk.bf16.mxu0 %vm698_vm0, %v3298_v54  ;;  %3204 = vmatprep.mubr.msk.bf16.mxu1 %vm698_vm0, %v3330_v0  ;;  %v3736_v54 = vadd.s32 %v3676_v6, %v1574_v39  ;;  %v1578_v0 = vadd.s32 104, %v3674_v5 }
  0x92   : > { %v3761_v16 = vadd.s32 %v3676_v6, %v1580_v63  ;;  %v3810_v63 = vadd.s32 %v3676_v6, %v1587_v46 }
  0x93   : > { %vm1832_vm12 = vcmp.lt.s32.totalorder %v3736_v54, 1920  ;;  %v1588_v54 = vadd.s32 184, %v3674_v5 }
  0x98   : > { %3141 = vmatmul.mubr.msk.bf16.gmra.mrb[56].mxu0 %vm698_vm0, %v3299_v56  ;;  %3205 = vmatmul.mubr.msk.bf16.gmra.mrb[56].mxu1 %vm698_vm0, %v3331_v1 }
  0x99   : > { %3144 = vmatprep.mubr.msk.bf16.mxu0 %vm698_vm0, %v3300_v58  ;;  %3208 = vmatprep.mubr.msk.bf16.mxu1 %vm698_vm0, %v3332_v2 }
  0xa0   : > { %3145 = vmatmul.mubr.msk.bf16.gmra.mrb[60].mxu0 %vm698_vm0, %v3301_v60  ;;  %3209 = vmatmul.mubr.msk.bf16.gmra.mrb[60].mxu1 %vm698_vm0, %v3333_v3  ;;  %vm1838_vm0 = vcmp.lt.s32.totalorder %v3761_v16, 1920 }
  0xfb   : > { %v3086_v17 = vpop.f32.mrb[0].mxu0  ;;  %v3150_v55 = vpop.f32.mrb[0].mxu1 }
  0xfc   : > { %v934_v20 = vadd.f32 %v3086_v17, %v3692_v13  ;;  %v925_v21 = vpop.f32.mrb[1].mxu0  ;;  %v3764_v17 = vadd.s32 %v3676_v6, %v1578_v0  ;;  %v1586_v0 = vadd.s32 168, %v3674_v5 }
  0xfd   : > { %v926_v25 = vadd.f32 %v3692_v13, %v925_v21  ;;  %v3087_v26 = vpop.f32.mrb[2].mxu0 }
  0xfe   : > { %1438 = vst [vmem:[%s3707_s28 + $0x10] sm:$0xff] %v934_v20  ;;  %v937_v28 = vadd.f32 %v3087_v26, %v3692_v13  ;;  %v928_v29 = vpop.f32.mrb[3].mxu0  ;;  %v2209_v36 = vsel %vm1825_vm2, %v934_v20, 0.0  ;;  %v1583_v26 = vadd.s32 144, %v3674_v5  ;;  %vm1836_vm15 = vcmp.lt.s32.totalorder %v3764_v17, 1920 }
  0xff   : > { %1436 = vst [vmem:[%s3707_s28] sm:$0xff] %v926_v25  ;;  %v2207_v31 = vsel %vm1823_vm1, %v926_v25, 0.0  ;;  %v929_v32 = vadd.f32 %v3692_v13, %v928_v29  ;;  %v2470_v47 = vmul.f32 %v2209_v36, %v2209_v36 }
 0x100   : > { %1439 = vst [vmem:[%s3707_s28 + $0x18] sm:$0xff] %v937_v28  ;;  %v2468_v40 = vmul.f32 %v2207_v31, %v2207_v31  ;;  %v2210_v43 = vsel %vm1826_vm4, %v937_v28, 0.0  ;;  %v1582_v28 = vadd.s32 136, %v3674_v5 }
 0x101   : > { %1437 = vst [vmem:[%s3707_s28 + $0x8] sm:$0xff] %v929_v32  ;;  %v2208_v37 = vsel %vm1824_vm3, %v929_v32, 0.0  ;;  %v2471_v56 = vmul.f32 %v2210_v43, %v2210_v43 }
 0x102   : > { %v2335_v41 = vadd.f32 %v2208_v37, %v2207_v31  ;;  %v2469_v42 = vmul.f32 %v2208_v37, %v2208_v37  ;;  %v3782_v37 = vadd.s32 %v3676_v6, %v1581_v18 }
 0x103   : > { %v3090_v44 = vpop.f32.mrb[4].mxu0 }
 0x104   : > { %v2336_v48 = vadd.f32 %v2335_v41, %v2209_v36  ;;  %v2596_v49 = vadd.f32 %v2469_v42, %v2468_v40  ;;  %v950_v50 = vadd.f32 %v3090_v44, %v3692_v13  ;;  %v941_v51 = vpop.f32.mrb[5].mxu0  ;;  %v3795_v44 = vadd.s32 %v3676_v6, %v1584_v27 }
 0x105   : > { %v942_v52 = vadd.f32 %v3692_v13, %v941_v51  ;;  %v3091_v53 = vpop.f32.mrb[6].mxu0  ;;  %vm1839_vm1 = vcmp.lt.s32.totalorder %v3782_v37, 1920 }
 0x106   : > { %v2337_v57 = vadd.f32 %v2336_v48, %v2210_v43  ;;  %v2597_v58 = vadd.f32 %v2596_v49, %v2470_v47  ;;  %1442 = vst [vmem:[%s3707_s28 + $0x30] sm:$0xff] %v950_v50  ;;  %v953_v59 = vadd.f32 %v3091_v53, %v3692_v13  ;;  %v944_v60 = vpop.f32.mrb[7].mxu0  ;;  %v2213_v7 = vsel %vm1829_vm5, %v950_v50, 0.0 }
 0x107   : > { %1440 = vst [vmem:[%s3707_s28 + $0x20] sm:$0xff] %v942_v52  ;;  %v2211_v61 = vsel %vm1827_vm6, %v942_v52, 0.0  ;;  %v945_v62 = vadd.f32 %v3692_v13, %v944_v60  ;;  %v2474_v19 = vmul.f32 %v2213_v7, %v2213_v7  ;;  %v3792_v43 = vadd.s32 %v3676_v6, %v1583_v26 }
 0x108   : > { %v2598_v1 = vadd.f32 %v2597_v58, %v2471_v56  ;;  %v2338_v2 = vadd.f32 %v2337_v57, %v2211_v61  ;;  %v2472_v3 = vmul.f32 %v2211_v61, %v2211_v61  ;;  %1443 = vst [vmem:[%s3707_s28 + $0x38] sm:$0xff] %v953_v59  ;;  %v2214_v14 = vsel %vm1830_vm7, %v953_v59, 0.0  ;;  %v1181_v61 = vpop.f32.mrb[1].mxu1 }
 0x109   : > { %1441 = vst [vmem:[%s3707_s28 + $0x28] sm:$0xff] %v945_v62  ;;  %v2212_v8 = vsel %vm1828_vm8, %v945_v62, 0.0  ;;  %v2475_v29 = vmul.f32 %v2214_v14, %v2214_v14  ;;  %v3799_v49 = vadd.s32 %v3676_v6, %v1582_v28  ;;  %v1585_v53 = vadd.s32 160, %v3674_v5 }
 0x10a   : > { %v2599_v10 = vadd.f32 %v2598_v1, %v2472_v3  ;;  %v2339_v11 = vadd.f32 %v2338_v2, %v2212_v8  ;;  %v2473_v12 = vmul.f32 %v2212_v8, %v2212_v8  ;;  %v1190_v60 = vadd.f32 %v3150_v55, %v3692_v13  ;;  %v3151_v2 = vpop.f32.mrb[2].mxu1 }
 0x10b   : > { %v3094_v15 = vpop.f32.mrb[8].mxu0  ;;  %v1182_v1 = vadd.f32 %v3692_v13, %v1181_v61  ;;  %vm1841_vm2 = vcmp.lt.s32.totalorder %v3792_v43, 1920  ;;  %vm1840_vm3 = vcmp.lt.s32.totalorder %v3799_v49, 1920  ;;  %v3824_v18 = vadd.s32 %v3676_v6, %v1585_v53 }
 0x10c   : > { %v2340_v20 = vadd.f32 %v2339_v11, %v2213_v7  ;;  %v2600_v21 = vadd.f32 %v2599_v10, %v2473_v12  ;;  %v966_v22 = vadd.f32 %v3094_v15, %v3692_v13  ;;  %v957_v23 = vpop.f32.mrb[9].mxu0  ;;  %1502 = vst [vmem:[%s3707_s28 + $0x210] sm:$0xff] %v1190_v60  ;;  %v1184_v12 = vpop.f32.mrb[3].mxu1  ;;  %vm1842_vm4 = vcmp.lt.s32.totalorder %v3795_v44, 1920 }
 0x10d   : > { %v958_v24 = vadd.f32 %v3692_v13, %v957_v23  ;;  %v3095_v25 = vpop.f32.mrb[10].mxu0  ;;  %1500 = vst [vmem:[%s3707_s28 + $0x200] sm:$0xff] %v1182_v1  ;;  %v1589_v26 = vadd.s32 192, %v3674_v5  ;;  %v1193_v17 = vadd.f32 %v3151_v2, %v3692_v13  ;;  %vm1845_vm5 = vcmp.lt.s32.totalorder %v3810_v63, 1920 }
 0x10e   : > { %v2341_v30 = vadd.f32 %v2340_v20, %v2214_v14  ;;  %v2601_v31 = vadd.f32 %v2600_v21, %v2474_v19  ;;  %1446 = vst [vmem:[%s3707_s28 + $0x50] sm:$0xff] %v966_v22  ;;  %v969_v32 = vadd.f32 %v3095_v25, %v3692_v13  ;;  %v960_v33 = vpop.f32.mrb[11].mxu0  ;;  %v2217_v40 = vsel %vm1833_vm9, %v966_v22, 0.0 }
 0x10f   : > { %1444 = vst [vmem:[%s3707_s28 + $0x40] sm:$0xff] %v958_v24  ;;  %v2215_v34 = vsel %vm1831_vm10, %v958_v24, 0.0  ;;  %v961_v36 = vadd.f32 %v3692_v13, %v960_v33  ;;  %v2478_v50 = vmul.f32 %v2217_v40, %v2217_v40  ;;  %v3827_v19 = vadd.s32 %v3676_v6, %v1588_v54  ;;  %1503 = vst [vmem:[%s3707_s28 + $0x218] sm:$0xff] %v1193_v17 }
 0x110   : > { %v2602_v39 = vadd.f32 %v2601_v31, %v2475_v29  ;;  %v2342_v41 = vadd.f32 %v2341_v30, %v2215_v34  ;;  %v2476_v42 = vmul.f32 %v2215_v34, %v2215_v34  ;;  %1447 = vst [vmem:[%s3707_s28 + $0x58] sm:$0xff] %v969_v32  ;;  %v2218_v51 = vsel %vm1834_vm11, %v969_v32, 0.0  ;;  %v3154_v34 = vpop.f32.mrb[4].mxu1 }
 0x111   : > { %1445 = vst [vmem:[%s3707_s28 + $0x48] sm:$0xff] %v961_v36  ;;  %v2216_v38 = vsel %vm1832_vm12, %v961_v36, 0.0  ;;  %v2479_v3 = vmul.f32 %v2218_v51, %v2218_v51  ;;  %v3838_v24 = vadd.s32 %v3676_v6, %v1586_v0  ;;  %v1591_v25 = vadd.s32 208, %v3674_v5  ;;  %v1197_v16 = vpop.f32.mrb[5].mxu1 }
 0x112   : > { %v2603_v47 = vadd.f32 %v2602_v39, %v2476_v42  ;;  %v2343_v35 = vadd.f32 %v2342_v41, %v2216_v38  ;;  %v2477_v48 = vmul.f32 %v2216_v38, %v2216_v38  ;;  %v1592_v29 = vadd.s32 216, %v3674_v5 }
 0x113   : > { %v3098_v52 = vpop.f32.mrb[12].mxu0  ;;  %v1185_v33 = vadd.f32 %v3692_v13, %v1184_v12  ;;  %v1206_v42 = vadd.f32 %v3154_v34, %v3692_v13  ;;  %vm1843_vm6 = vcmp.lt.s32.totalorder %v3824_v18, 1920  ;;  %vm1844_vm7 = vcmp.lt.s32.totalorder %v3838_v24, 1920 }
 0x114   : > { %v2344_v56 = vadd.f32 %v2343_v35, %v2217_v40  ;;  %v2604_v57 = vadd.f32 %v2603_v47, %v2477_v48  ;;  %v982_v58 = vadd.f32 %v3098_v52, %v3692_v13  ;;  %v973_v59 = vpop.f32.mrb[13].mxu0  ;;  %v1590_v47 = vadd.s32 200, %v3674_v5  ;;  %v3155_v48 = vpop.f32.mrb[6].mxu1 }
 0x115   : > { %v974_v45 = vadd.f32 %v3692_v13, %v973_v59  ;;  %v3099_v62 = vpop.f32.mrb[14].mxu0  ;;  %1501 = vst [vmem:[%s3707_s28 + $0x208] sm:$0xff] %v1185_v33  ;;  %v1198_v35 = vadd.f32 %v3692_v13, %v1197_v16  ;;  %1506 = vst [vmem:[%s3707_s28 + $0x230] sm:$0xff] %v1206_v42  ;;  %v1200_v55 = vpop.f32.mrb[7].mxu1  ;;  %v3868_v59 = vadd.s32 %v3676_v6, %v1589_v26  ;;  %vm1846_vm8 = vcmp.lt.s32.totalorder %v3827_v19, 1920 }
 0x116   : > { %v2345_v7 = vadd.f32 %v2344_v56, %v2218_v51  ;;  %v2605_v8 = vadd.f32 %v2604_v57, %v2478_v50  ;;  %1450 = vst [vmem:[%s3707_s28 + $0x70] sm:$0xff] %v982_v58  ;;  %v985_v10 = vadd.f32 %v3099_v62, %v3692_v13  ;;  %v976_v11 = vpop.f32.mrb[15].mxu0  ;;  %v2221_v21 = vsel %vm1837_vm14, %v982_v58, 0.0 }
 0x117   : > { %1448 = vst [vmem:[%s3707_s28 + $0x60] sm:$0xff] %v974_v45  ;;  %v2219_v14 = vsel %vm1835_vm13, %v974_v45, 0.0  ;;  %v977_v15 = vadd.f32 %v3692_v13, %v976_v11  ;;  %v2482_v30 = vmul.f32 %v2221_v21, %v2221_v21  ;;  %v3865_v58 = vadd.s32 %v3676_v6, %v1591_v25  ;;  %1504 = vst [vmem:[%s3707_s28 + $0x220] sm:$0xff] %v1198_v35 }
 0x118   : > { %v2606_v20 = vadd.f32 %v2605_v8, %v2479_v3  ;;  %v2346_v22 = vadd.f32 %v2345_v7, %v2219_v14  ;;  %v2480_v23 = vmul.f32 %v2219_v14, %v2219_v14  ;;  %1451 = vst [vmem:[%s3707_s28 + $0x78] sm:$0xff] %v985_v10  ;;  %v2222_v31 = vsel %vm1838_vm0, %v985_v10, 0.0 }
 0x119   : > { %1449 = vst [vmem:[%s3707_s28 + $0x68] sm:$0xff] %v977_v15  ;;  %v2220_v4 = vsel %vm1836_vm15, %v977_v15, 0.0  ;;  %v2483_v50 = vmul.f32 %v2222_v31, %v2222_v31  ;;  %v3874_v62 = vadd.s32 %v3676_v6, %v1592_v29  ;;  %v3882_v1 = vadd.s32 %v3676_v6, %v1590_v47  ;;  %v3158_v15 = vpop.f32.mrb[8].mxu1 }
 0x11a   : > { %v2607_v27 = vadd.f32 %v2606_v20, %v2480_v23  ;;  %v2347_v28 = vadd.f32 %v2346_v22, %v2220_v4  ;;  %v2481_v9 = vmul.f32 %v2220_v4, %v2220_v4  ;;  %v1595_v2 = vadd.s32 240, %v3674_v5  ;;  %v1213_v44 = vpop.f32.mrb[9].mxu1 }
 0x11b   : > { %v3102_v32 = vpop.f32.mrb[16].mxu0  ;;  %v1593_v10 = vadd.s32 224, %v3674_v5  ;;  %v1596_v43 = vadd.s32 248, %v3674_v5  ;;  %v1209_v49 = vadd.f32 %v3155_v48, %v3692_v13  ;;  %v1201_v14 = vadd.f32 %v3692_v13, %v1200_v55  ;;  %v3159_v29 = vpop.f32.mrb[10].mxu1 }
 0x11c   : > { %v2348_v36 = vadd.f32 %v2347_v28, %v2221_v21  ;;  %v2608_v39 = vadd.f32 %v2607_v27, %v2481_v9  ;;  %v998_v40 = vadd.f32 %v3102_v32, %v3692_v13  ;;  %v989_v41 = vpop.f32.mrb[17].mxu0  ;;  %vm1847_vm9 = vcmp.lt.s32.totalorder %v3868_v59, 1920  ;;  %v1216_v34 = vpop.f32.mrb[11].mxu1 }
 0x11d   : > { %v990_v38 = vadd.f32 %v3692_v13, %v989_v41  ;;  %v3103_v46 = vpop.f32.mrb[18].mxu0  ;;  %v3895_v27 = vadd.s32 %v3676_v6, %v1595_v2  ;;  %v1594_v28 = vadd.s32 232, %v3674_v5  ;;  %1507 = vst [vmem:[%s3707_s28 + $0x238] sm:$0xff] %v1209_v49  ;;  %1505 = vst [vmem:[%s3707_s28 + $0x228] sm:$0xff] %v1201_v14  ;;  %v1222_v9 = vadd.f32 %v3158_v15, %v3692_v13 }
 0x11e   : > { %v2349_v51 = vadd.f32 %v2348_v36, %v2222_v31  ;;  %v2609_v52 = vadd.f32 %v2608_v39, %v2482_v30  ;;  %1454 = vst [vmem:[%s3707_s28 + $0x90] sm:$0xff] %v998_v40  ;;  %v1001_v53 = vadd.f32 %v3103_v46, %v3692_v13  ;;  %v992_v54 = vpop.f32.mrb[19].mxu0  ;;  %v2225_v37 = vsel %vm1841_vm2, %v998_v40, 0.0 }
 0x11f   : > { %1452 = vst [vmem:[%s3707_s28 + $0x80] sm:$0xff] %v990_v38  ;;  %v2223_v56 = vsel %vm1839_vm1, %v990_v38, 0.0  ;;  %v993_v57 = vadd.f32 %v3692_v13, %v992_v54  ;;  %v2486_v20 = vmul.f32 %v2225_v37, %v2225_v37  ;;  %vm1849_vm10 = vcmp.lt.s32.totalorder %v3865_v58, 1920  ;;  %1510 = vst [vmem:[%s3707_s28 + $0x250] sm:$0xff] %v1222_v9 }
 0x120   : > { %v2610_v60 = vadd.f32 %v2609_v52, %v2483_v50  ;;  %v2350_v61 = vadd.f32 %v2349_v51, %v2223_v56  ;;  %v2484_v45 = vmul.f32 %v2223_v56, %v2223_v56  ;;  %1455 = vst [vmem:[%s3707_s28 + $0x98] sm:$0xff] %v1001_v53  ;;  %v2226_v11 = vsel %vm1842_vm4, %v1001_v53, 0.0 }
 0x121   : > { %1453 = vst [vmem:[%s3707_s28 + $0x88] sm:$0xff] %v993_v57  ;;  %v2224_v0 = vsel %vm1840_vm3, %v993_v57, 0.0  ;;  %v2487_v30 = vmul.f32 %v2226_v11, %v2226_v11  ;;  %vm1848_vm11 = vcmp.lt.s32.totalorder %v3882_v1, 1920  ;;  %v3912_v41 = vadd.s32 %v3676_v6, %v1593_v10  ;;  %v3162_v57 = vpop.f32.mrb[12].mxu1 }
 0x122   : > { %v2611_v3 = vadd.f32 %v2610_v60, %v2484_v45  ;;  %v2351_v7 = vadd.f32 %v2350_v61, %v2224_v0  ;;  %v2485_v8 = vmul.f32 %v2224_v0, %v2224_v0  ;;  %vm1850_vm12 = vcmp.lt.s32.totalorder %v3874_v62, 1920  ;;  %v1229_v0 = vpop.f32.mrb[13].mxu1 }
 0x123   : > { %v3106_v12 = vpop.f32.mrb[20].mxu0  ;;  %v3918_v46 = vadd.s32 %v3676_v6, %v1596_v43  ;;  %v3924_v18 = vadd.s32 %v3676_v6, %v1594_v28  ;;  %v1599_v47 = vadd.s32 272, %v3674_v5  ;;  %v1597_v35 = vadd.s32 256, %v3674_v5  ;;  %v3163_v10 = vpop.f32.mrb[14].mxu1 }
 0x124   : > { %v2352_v21 = vadd.f32 %v2351_v7, %v2225_v37  ;;  %v2612_v22 = vadd.f32 %v2611_v3, %v2485_v8  ;;  %v1014_v23 = vadd.f32 %v3106_v12, %v3692_v13  ;;  %v1005_v4 = vpop.f32.mrb[21].mxu0  ;;  %v1214_v55 = vadd.f32 %v3692_v13, %v1213_v44  ;;  %v1232_v15 = vpop.f32.mrb[15].mxu1 }
 0x125   : > { %v1006_v25 = vadd.f32 %v3692_v13, %v1005_v4  ;;  %v3107_v26 = vpop.f32.mrb[22].mxu0  ;;  %v1225_v24 = vadd.f32 %v3159_v29, %v3692_v13  ;;  %v1217_v56 = vadd.f32 %v3692_v13, %v1216_v34  ;;  %v1238_v19 = vadd.f32 %v3162_v57, %v3692_v13 }
 0x126   : > { %v2353_v31 = vadd.f32 %v2352_v21, %v2226_v11  ;;  %v2613_v32 = vadd.f32 %v2612_v22, %v2486_v20  ;;  %1458 = vst [vmem:[%s3707_s28 + $0xb0] sm:$0xff] %v1014_v23  ;;  %v1017_v17 = vadd.f32 %v3107_v26, %v3692_v13  ;;  %v1008_v33 = vpop.f32.mrb[23].mxu0  ;;  %v2229_v36 = vsel %vm1845_vm5, %v1014_v23, 0.0  ;;  %1508 = vst [vmem:[%s3707_s28 + $0x240] sm:$0xff] %v1214_v55 }
 0x127   : > { %1456 = vst [vmem:[%s3707_s28 + $0xa0] sm:$0xff] %v1006_v25  ;;  %v2227_v39 = vsel %vm1843_vm6, %v1006_v25, 0.0  ;;  %v1009_v40 = vadd.f32 %v3692_v13, %v1008_v33  ;;  %v2490_v48 = vmul.f32 %v2229_v36, %v2229_v36  ;;  %vm1853_vm13 = vcmp.lt.s32.totalorder %v3895_v27, 1920  ;;  %1511 = vst [vmem:[%s3707_s28 + $0x258] sm:$0xff] %v1225_v24 }
 0x128   : > { %v2614_v42 = vadd.f32 %v2613_v32, %v2487_v30  ;;  %v2354_v16 = vadd.f32 %v2353_v31, %v2227_v39  ;;  %v2488_v38 = vmul.f32 %v2227_v39, %v2227_v39  ;;  %1459 = vst [vmem:[%s3707_s28 + $0xb8] sm:$0xff] %v1017_v17  ;;  %v2230_v53 = vsel %vm1846_vm8, %v1017_v17, 0.0  ;;  %1509 = vst [vmem:[%s3707_s28 + $0x248] sm:$0xff] %v1217_v56 }
 0x129   : > { %1457 = vst [vmem:[%s3707_s28 + $0xa8] sm:$0xff] %v1009_v40  ;;  %v2228_v63 = vsel %vm1844_vm7, %v1009_v40, 0.0  ;;  %vm1851_vm14 = vcmp.lt.s32.totalorder %v3912_v41, 1920  ;;  %v1600_v7 = vadd.s32 280, %v3674_v5  ;;  %v1598_v8 = vadd.s32 264, %v3674_v5  ;;  %1514 = vst [vmem:[%s3707_s28 + $0x270] sm:$0xff] %v1238_v19 }
 0x12a   : > { %v2615_v50 = vadd.f32 %v2614_v42, %v2488_v38  ;;  %v2355_v51 = vadd.f32 %v2354_v16, %v2228_v63  ;;  %v2489_v52 = vmul.f32 %v2228_v63, %v2228_v63  ;;  %v2491_v11 = vmul.f32 %v2230_v53, %v2230_v53 }
 0x12b   : > { %v3110_v54 = vpop.f32.mrb[24].mxu0  ;;  %vm1852_vm15 = vcmp.lt.s32.totalorder %v3924_v18, 1920  ;;  %v3952_v22 = vadd.s32 %v3676_v6, %v1599_v47  ;;  %vm1854_vm0 = vcmp.lt.s32.totalorder %v3918_v46, 1920  ;;  %v3957_v25 = vadd.s32 %v3676_v6, %v1597_v35 }
 0x12c   : > { %v2356_v60 = vadd.f32 %v2355_v51, %v2229_v36  ;;  %v2616_v61 = vadd.f32 %v2615_v50, %v2489_v52  ;;  %v1030_v45 = vadd.f32 %v3110_v54, %v3692_v13  ;;  %v1021_v37 = vpop.f32.mrb[25].mxu0  ;;  %v3965_v28 = vadd.s32 %v3676_v6, %v1600_v7  ;;  %v3166_v36 = vpop.f32.mrb[16].mxu1 }
 0x12d   : > { %v1022_v2 = vadd.f32 %v3692_v13, %v1021_v37  ;;  %v3111_v3 = vpop.f32.mrb[26].mxu0  ;;  %v3968_v9 = vadd.s32 %v3676_v6, %v1598_v8  ;;  %v1603_v32 = vadd.s32 304, %v3674_v5  ;;  %v1230_v1 = vadd.f32 %v3692_v13, %v1229_v0  ;;  %v1245_v62 = vpop.f32.mrb[17].mxu1 }
 0x12e   : > { %v2357_v12 = vadd.f32 %v2356_v60, %v2230_v53  ;;  %v2617_v43 = vadd.f32 %v2616_v61, %v2490_v48  ;;  %1462 = vst [vmem:[%s3707_s28 + $0xd0] sm:$0xff] %v1030_v45  ;;  %v1033_v49 = vadd.f32 %v3111_v3, %v3692_v13  ;;  %v1024_v14 = vpop.f32.mrb[27].mxu0  ;;  %v2233_v59 = vsel %vm1849_vm10, %v1030_v45, 0.0  ;;  %v3167_v51 = vpop.f32.mrb[18].mxu1 }
 0x12f   : > { %1460 = vst [vmem:[%s3707_s28 + $0xc0] sm:$0xff] %v1022_v2  ;;  %v2231_v20 = vsel %vm1847_vm9, %v1022_v2, 0.0  ;;  %v1025_v21 = vadd.f32 %v3692_v13, %v1024_v14  ;;  %v1241_v33 = vadd.f32 %v3163_v10, %v3692_v13  ;;  %v1233_v34 = vadd.f32 %v3692_v13, %v1232_v15  ;;  %1512 = vst [vmem:[%s3707_s28 + $0x260] sm:$0xff] %v1230_v1  ;;  %v3987_v56 = vpop.f32.mrb[19].mxu1 }
 0x130   : > { %v2618_v23 = vadd.f32 %v2617_v43, %v2491_v11  ;;  %v2358_v4 = vadd.f32 %v2357_v12, %v2231_v20  ;;  %v2492_v44 = vmul.f32 %v2231_v20, %v2231_v20  ;;  %1463 = vst [vmem:[%s3707_s28 + $0xd8] sm:$0xff] %v1033_v49  ;;  %v2234_v17 = vsel %vm1850_vm12, %v1033_v49, 0.0  ;;  %v3170_v14 = vpop.f32.mrb[20].mxu1 }
 0x131   : > { %1461 = vst [vmem:[%s3707_s28 + $0xc8] sm:$0xff] %v1025_v21  ;;  %v2232_v26 = vsel %vm1848_vm11, %v1025_v21, 0.0  ;;  %v2494_v39 = vmul.f32 %v2233_v59, %v2233_v59  ;;  %v1601_v35 = vadd.s32 288, %v3674_v5  ;;  %v1604_v48 = vadd.s32 312, %v3674_v5  ;;  %1515 = vst [vmem:[%s3707_s28 + $0x278] sm:$0xff] %v1241_v33 }
 0x132   : > { %v2619_v29 = vadd.f32 %v2618_v23, %v2492_v44  ;;  %v2359_v30 = vadd.f32 %v2358_v4, %v2232_v26  ;;  %v2493_v31 = vmul.f32 %v2232_v26, %v2232_v26  ;;  %1513 = vst [vmem:[%s3707_s28 + $0x268] sm:$0xff] %v1233_v34  ;;  %v1254_v50 = vadd.f32 %v3166_v36, %v3692_v13  ;;  %v4021_v44 = vpop.f32.mrb[21].mxu1 }
 0x133   : > { %v3114_v58 = vpop.f32.mrb[28].mxu0  ;;  %v2495_v52 = vmul.f32 %v2234_v17, %v2234_v17  ;;  %vm1857_vm1 = vcmp.lt.s32.totalorder %v3952_v22, 1920  ;;  %vm1855_vm2 = vcmp.lt.s32.totalorder %v3957_v25, 1920  ;;  %v1602_v61 = vadd.s32 296, %v3674_v5 }
 0x134   : > { %v2360_v40 = vadd.f32 %v2359_v30, %v2233_v59  ;;  %v2620_v42 = vadd.f32 %v2619_v29, %v2493_v31  ;;  %v1046_v16 = vadd.f32 %v3114_v58, %v3692_v13  ;;  %v1037_v38 = vpop.f32.mrb[29].mxu0  ;;  %1518 = vst [vmem:[%s3707_s28 + $0x290] sm:$0xff] %v1254_v50  ;;  %vm1858_vm3 = vcmp.lt.s32.totalorder %v3965_v28, 1920  ;;  %v4029_v31 = vpop.f32.mrb[22].mxu1 }
 0x135   : > { %v1038_v63 = vadd.f32 %v3692_v13, %v1037_v38  ;;  %v3115_v47 = vpop.f32.mrb[30].mxu0  ;;  %vm1856_vm4 = vcmp.lt.s32.totalorder %v3968_v9, 1920  ;;  %v4005_v2 = vadd.s32 %v3676_v6, %v1603_v32  ;;  %v4008_v3 = vadd.s32 %v3676_v6, %v1601_v35  ;;  %v4034_v34 = vpop.f32.mrb[23].mxu1 }
 0x136   : > { %v2361_v53 = vadd.f32 %v2360_v40, %v2234_v17  ;;  %v2621_v54 = vadd.f32 %v2620_v42, %v2494_v39  ;;  %1466 = vst [vmem:[%s3707_s28 + $0xf0] sm:$0xff] %v1046_v16  ;;  %v1049_v55 = vadd.f32 %v3115_v47, %v3692_v13  ;;  %v1040_v24 = vpop.f32.mrb[31].mxu0  ;;  %v2237_v37 = vsel %vm1853_vm13, %v1046_v16, 0.0 }
 0x137   : > { %1464 = vst [vmem:[%s3707_s28 + $0xe0] sm:$0xff] %v1038_v63  ;;  %v2235_v57 = vsel %vm1851_vm14, %v1038_v63, 0.0  ;;  %v1041_v60 = vadd.f32 %v3692_v13, %v1040_v24  ;;  %v4011_v10 = vadd.s32 %v3676_v6, %v1604_v48  ;;  %v2498_v11 = vmul.f32 %v2237_v37, %v2237_v37 }
 0x138   : > { %v2622_v45 = vadd.f32 %v2621_v54, %v2495_v52  ;;  %v2362_v19 = vadd.f32 %v2361_v53, %v2235_v57  ;;  %v2496_v0 = vmul.f32 %v2235_v57, %v2235_v57  ;;  %1467 = vst [vmem:[%s3707_s28 + $0xf8] sm:$0xff] %v1049_v55  ;;  %v2238_v12 = vsel %vm1854_vm0, %v1049_v55, 0.0  ;;  %v4069_v55 = vpop.f32.mrb[24].mxu1 }
 0x139   : > { %1465 = vst [vmem:[%s3707_s28 + $0xe8] sm:$0xff] %v1041_v60  ;;  %v2236_v41 = vsel %vm1852_vm15, %v1041_v60, 0.0  ;;  %v4016_v43 = vadd.s32 %v3676_v6, %v1602_v61  ;;  %v1246_v49 = vadd.f32 %v3692_v13, %v1245_v62  ;;  %v1257_v4 = vadd.f32 %v3167_v51, %v3692_v13 }
 0x13a   : > { %v2623_v7 = vadd.f32 %v2622_v45, %v2496_v0  ;;  %v2363_v27 = vadd.f32 %v2362_v19, %v2236_v41  ;;  %v2497_v8 = vmul.f32 %v2236_v41, %v2236_v41  ;;  %vm1861_vm5 = vcmp.lt.s32.totalorder %v4005_v2, 1920  ;;  %v4072_v45 = vpop.f32.mrb[25].mxu1 }
 0x13b   : > { %v3118_v18 = vpop.f32.mrb[32].mxu0  ;;  %v1607_v26 = vadd.s32 336, %v3674_v5  ;;  %v1605_v29 = vadd.s32 320, %v3674_v5  ;;  %v1608_v30 = vadd.s32 344, %v3674_v5  ;;  %1516 = vst [vmem:[%s3707_s28 + $0x280] sm:$0xff] %v1246_v49  ;;  %v2499_v32 = vmul.f32 %v2238_v12, %v2238_v12  ;;  %1519 = vst [vmem:[%s3707_s28 + $0x298] sm:$0xff] %v1257_v4 }
 0x13c   : > { %v2364_v15 = vadd.f32 %v2363_v27, %v2237_v37  ;;  %v2624_v20 = vadd.f32 %v2623_v7, %v2497_v8  ;;  %v1062_v21 = vadd.f32 %v3118_v18, %v3692_v13  ;;  %v1053_v23 = vpop.f32.mrb[33].mxu0  ;;  %vm1859_vm6 = vcmp.lt.s32.totalorder %v4008_v3, 1920  ;;  %v4082_v7 = vpop.f32.mrb[26].mxu1 }
 0x13d   : > { %v1054_v46 = vadd.f32 %v3692_v13, %v1053_v23  ;;  %v3119_v59 = vpop.f32.mrb[34].mxu0  ;;  %v1606_v40 = vadd.s32 328, %v3674_v5  ;;  %vm1862_vm7 = vcmp.lt.s32.totalorder %v4011_v10, 1920  ;;  %vm1860_vm8 = vcmp.lt.s32.totalorder %v4016_v43, 1920  ;;  %v4087_v49 = vpop.f32.mrb[27].mxu1 }
 0x13e   : > { %v2365_v17 = vadd.f32 %v2364_v15, %v2238_v12  ;;  %v2625_v58 = vadd.f32 %v2624_v20, %v2498_v11  ;;  %1470 = vst [vmem:[%s3707_s28 + $0x110] sm:$0xff] %v1062_v21  ;;  %v1065_v1 = vadd.f32 %v3119_v59, %v3692_v13  ;;  %v1056_v33 = vpop.f32.mrb[35].mxu0  ;;  %v2241_v62 = vsel %vm1857_vm1, %v1062_v21, 0.0 }
 0x13f   : > { %1468 = vst [vmem:[%s3707_s28 + $0x100] sm:$0xff] %v1054_v46  ;;  %v2239_v36 = vsel %vm1855_vm2, %v1054_v46, 0.0  ;;  %v1057_v39 = vadd.f32 %v3692_v13, %v1056_v33  ;;  %v4051_v63 = vadd.s32 %v3676_v6, %v1607_v26  ;;  %v4054_v47 = vadd.s32 %v3676_v6, %v1605_v29 }
 0x140   : > { %v2626_v42 = vadd.f32 %v2625_v58, %v2499_v32  ;;  %v2366_v16 = vadd.f32 %v2365_v17, %v2239_v36  ;;  %v2500_v38 = vmul.f32 %v2239_v36, %v2239_v36  ;;  %1471 = vst [vmem:[%s3707_s28 + $0x118] sm:$0xff] %v1065_v1  ;;  %v4057_v51 = vadd.s32 %v3676_v6, %v1608_v30  ;;  %v4123_v36 = vpop.f32.mrb[28].mxu1 }
 0x141   : > { %1469 = vst [vmem:[%s3707_s28 + $0x108] sm:$0xff] %v1057_v39  ;;  %v2240_v25 = vsel %vm1856_vm4, %v1057_v39, 0.0  ;;  %v2242_v22 = vsel %vm1858_vm3, %v1065_v1, 0.0  ;;  %v4062_v9 = vadd.s32 %v3676_v6, %v1606_v40  ;;  %v1611_v53 = vadd.s32 368, %v3674_v5 }
 0x142   : > { %v2627_v35 = vadd.f32 %v2626_v42, %v2500_v38  ;;  %v2367_v48 = vadd.f32 %v2366_v16, %v2240_v25  ;;  %v2501_v50 = vmul.f32 %v2240_v25, %v2240_v25  ;;  %v4067_v54 = vadd.f32 %v3692_v13, %v3987_v56  ;;  %v4130_v38 = vpop.f32.mrb[29].mxu1 }
 0x143   : > { %v3122_v52 = vpop.f32.mrb[36].mxu0  ;;  %v2502_v24 = vmul.f32 %v2241_v62, %v2241_v62  ;;  %v1609_v0 = vadd.s32 352, %v3674_v5  ;;  %v1612_v56 = vadd.s32 376, %v3674_v5  ;;  %v4080_v41 = vadd.f32 %v3170_v14, %v3692_v13 }
 0x144   : > { %v2368_v57 = vadd.f32 %v2367_v48, %v2241_v62  ;;  %v2628_v60 = vadd.f32 %v2627_v35, %v2501_v50  ;;  %v1078_v28 = vadd.f32 %v3122_v52, %v3692_v13  ;;  %v1069_v61 = vpop.f32.mrb[37].mxu0  ;;  %1517 = vst [vmem:[%s3707_s28 + $0x288] sm:$0xff] %v4067_v54  ;;  %v2503_v27 = vmul.f32 %v2242_v22, %v2242_v22  ;;  %v4139_v50 = vpop.f32.mrb[30].mxu1 }
 0x145   : > { %v1070_v37 = vadd.f32 %v3692_v13, %v1069_v61  ;;  %v3123_v19 = vpop.f32.mrb[38].mxu0  ;;  %vm1865_vm9 = vcmp.lt.s32.totalorder %v4051_v63, 1920  ;;  %vm1863_vm10 = vcmp.lt.s32.totalorder %v4054_v47, 1920  ;;  %v1610_v20 = vadd.s32 360, %v3674_v5  ;;  %1522 = vst [vmem:[%s3707_s28 + $0x2b0] sm:$0xff] %v4080_v41 }
 0x146   : > { %v2369_v8 = vadd.f32 %v2368_v57, %v2242_v22  ;;  %v2629_v11 = vadd.f32 %v2628_v60, %v2502_v24  ;;  %1474 = vst [vmem:[%s3707_s28 + $0x130] sm:$0xff] %v1078_v28  ;;  %v1081_v12 = vadd.f32 %v3123_v19, %v3692_v13  ;;  %v1072_v18 = vpop.f32.mrb[39].mxu0  ;;  %v2245_v23 = vsel %vm1861_vm5, %v1078_v28, 0.0  ;;  %v4145_v57 = vpop.f32.mrb[31].mxu1 }
 0x147   : > { %1472 = vst [vmem:[%s3707_s28 + $0x120] sm:$0xff] %v1070_v37  ;;  %v2243_v14 = vsel %vm1859_vm6, %v1070_v37, 0.0  ;;  %v1073_v15 = vadd.f32 %v3692_v13, %v1072_v18  ;;  %vm1866_vm11 = vcmp.lt.s32.totalorder %v4057_v51, 1920  ;;  %vm1864_vm12 = vcmp.lt.s32.totalorder %v4062_v9, 1920 }
 0x148   : > { %v2630_v21 = vadd.f32 %v2629_v11, %v2503_v27  ;;  %v2370_v4 = vadd.f32 %v2369_v8, %v2243_v14  ;;  %v2504_v46 = vmul.f32 %v2243_v14, %v2243_v14  ;;  %1475 = vst [vmem:[%s3707_s28 + $0x138] sm:$0xff] %v1081_v12  ;;  %v4106_v59 = vadd.s32 %v3676_v6, %v1611_v53 }
 0x149   : > { %1473 = vst [vmem:[%s3707_s28 + $0x128] sm:$0xff] %v1073_v15  ;;  %v2244_v3 = vsel %vm1860_vm8, %v1073_v15, 0.0  ;;  %v4109_v26 = vadd.s32 %v3676_v6, %v1609_v0  ;;  %v4112_v32 = vadd.s32 %v3676_v6, %v1612_v56  ;;  %v2506_v17 = vmul.f32 %v2245_v23, %v2245_v23 }
 0x14a   : > { %v2631_v29 = vadd.f32 %v2630_v21, %v2504_v46  ;;  %v2371_v2 = vadd.f32 %v2370_v4, %v2244_v3  ;;  %v2505_v30 = vmul.f32 %v2244_v3, %v2244_v3  ;;  %v2246_v58 = vsel %vm1862_vm7, %v1081_v12, 0.0 }
 0x14b   : > { %v3126_v43 = vpop.f32.mrb[40].mxu0  ;;  %v4117_v1 = vadd.s32 %v3676_v6, %v1610_v20  ;;  %v4121_v33 = vadd.f32 %v3692_v13, %v4021_v44  ;;  %v4128_v10 = vadd.f32 %v4029_v31, %v3692_v13  ;;  %vm1869_vm13 = vcmp.lt.s32.totalorder %v4106_v59, 1920  ;;  %v4179_v20 = vld [vmem:[%s4966_s2] ss:$0 sm:$0xff] }
 0x14c   : > { %v2372_v39 = vadd.f32 %v2371_v2, %v2245_v23  ;;  %v2632_v40 = vadd.f32 %v2631_v29, %v2505_v30  ;;  %v1094_v42 = vadd.f32 %v3126_v43, %v3692_v13  ;;  %v1085_v16 = vpop.f32.mrb[41].mxu0  ;;  %v1615_v25 = vadd.s32 400, %v3674_v5  ;;  %v4185_v23 = vpop.f32.mrb[32].mxu1 }
 0x14d   : > { %v1086_v62 = vadd.f32 %v3692_v13, %v1085_v16  ;;  %v3127_v44 = vpop.f32.mrb[42].mxu0  ;;  %v1613_v35 = vadd.s32 384, %v3674_v5  ;;  %v1616_v48 = vadd.s32 408, %v3674_v5  ;;  %1520 = vst [vmem:[%s3707_s28 + $0x2a0] sm:$0xff] %v4121_v33  ;;  %v2507_v31 = vmul.f32 %v2246_v58, %v2246_v58  ;;  %1523 = vst [vmem:[%s3707_s28 + $0x2b8] sm:$0xff] %v4128_v10  ;;  %v4188_v2 = vpop.f32.mrb[33].mxu1 }
 0x14e   : > { %v2373_v22 = vadd.f32 %v2372_v39, %v2246_v58  ;;  %v2633_v52 = vadd.f32 %v2632_v40, %v2506_v17  ;;  %1478 = vst [vmem:[%s3707_s28 + $0x150] sm:$0xff] %v1094_v42  ;;  %v1097_v53 = vadd.f32 %v3127_v44, %v3692_v13  ;;  %v1088_v24 = vpop.f32.mrb[43].mxu0  ;;  %vm1867_vm14 = vcmp.lt.s32.totalorder %v4109_v26, 1920  ;;  %v4199_v39 = vpop.f32.mrb[34].mxu1 }
 0x14f   : > { %1476 = vst [vmem:[%s3707_s28 + $0x140] sm:$0xff] %v1086_v62  ;;  %v2247_v60 = vsel %vm1863_vm10, %v1086_v62, 0.0  ;;  %v1089_v28 = vadd.f32 %v3692_v13, %v1088_v24  ;;  %v1614_v61 = vadd.s32 392, %v3674_v5  ;;  %vm1870_vm15 = vcmp.lt.s32.totalorder %v4112_v32, 1920 }
 0x150   : > { %v2634_v37 = vadd.f32 %v2633_v52, %v2507_v31  ;;  %v2374_v19 = vadd.f32 %v2373_v22, %v2247_v60  ;;  %v2508_v0 = vmul.f32 %v2247_v60, %v2247_v60  ;;  %1479 = vst [vmem:[%s3707_s28 + $0x158] sm:$0xff] %v1097_v53  ;;  %vm1868_vm0 = vcmp.lt.s32.totalorder %v4117_v1, 1920 }
 0x151   : > { %v2249_v56 = vsel %vm1865_vm9, %v1094_v42, 0.0  ;;  %1477 = vst [vmem:[%s3707_s28 + $0x148] sm:$0xff] %v1089_v28  ;;  %v2248_v47 = vsel %vm1864_vm12, %v1089_v28, 0.0  ;;  %v4162_v13 = vadd.s32 %v3676_v6, %v1615_v25  ;;  %v4165_v27 = vadd.s32 %v3676_v6, %v1613_v35  ;;  %v4204_v25 = vpop.f32.mrb[35].mxu1 }
 0x152   : > { %v2635_v8 = vadd.f32 %v2634_v37, %v2508_v0  ;;  %v2375_v11 = vadd.f32 %v2374_v19, %v2248_v47  ;;  %v2509_v12 = vmul.f32 %v2248_v47, %v2248_v47  ;;  %v4168_v18 = vadd.s32 %v3676_v6, %v1616_v48 }
 0x153   : > { %v2250_v63 = vsel %vm1866_vm11, %v1097_v53, 0.0  ;;  %v3130_v14 = vpop.f32.mrb[44].mxu0  ;;  %v4173_v9 = vadd.s32 %v3676_v6, %v1614_v61  ;;  %v1619_v15 = vadd.s32 432, %v3674_v5  ;;  %v4183_v21 = vadd.f32 %v4179_v20, %v4034_v34 }
 0x154   : > { %v2510_v51 = vmul.f32 %v2249_v56, %v2249_v56  ;;  %v2376_v4 = vadd.f32 %v2375_v11, %v2249_v56  ;;  %v2636_v46 = vadd.f32 %v2635_v8, %v2509_v12  ;;  %v1110_v3 = vadd.f32 %v4179_v20, %v3130_v14  ;;  %v1101_v29 = vpop.f32.mrb[45].mxu0  ;;  %v4238_v8 = vpop.f32.mrb[36].mxu1 }
 0x155   : > { %v1102_v30 = vadd.f32 %v4179_v20, %v1101_v29  ;;  %v3131_v17 = vpop.f32.mrb[46].mxu0  ;;  %v1617_v58 = vadd.s32 416, %v3674_v5  ;;  %v1620_v34 = vadd.s32 440, %v3674_v5  ;;  %1521 = vst [vmem:[%s3707_s28 + $0x2a8] sm:$0xff] %v4183_v21  ;;  %v4197_v43 = vadd.f32 %v4179_v20, %v4069_v55 }
 0x156   : > { %v2511_v40 = vmul.f32 %v2250_v63, %v2250_v63  ;;  %v2377_v42 = vadd.f32 %v2376_v4, %v2250_v63  ;;  %v2637_v16 = vadd.f32 %v2636_v46, %v2510_v51  ;;  %1482 = vst [vmem:[%s3707_s28 + $0x170] sm:$0xff] %v1110_v3  ;;  %v1113_v62 = vadd.f32 %v4179_v20, %v3131_v17  ;;  %v1104_v44 = vpop.f32.mrb[47].mxu0 }
 0x157   : > { %vm1873_vm1 = vcmp.lt.s32.totalorder %v4162_v13, 1920  ;;  %1480 = vst [vmem:[%s3707_s28 + $0x160] sm:$0xff] %v1102_v30  ;;  %v2251_v55 = vsel %vm1867_vm14, %v1102_v30, 0.0  ;;  %v1105_v35 = vadd.f32 %v4179_v20, %v1104_v44  ;;  %vm1871_vm2 = vcmp.lt.s32.totalorder %v4165_v27, 1920  ;;  %1526 = vst [vmem:[%s3707_s28 + $0x2d0] sm:$0xff] %v4197_v43 }
 0x158   : > { %vm1872_vm3 = vcmp.lt.s32.totalorder %v4173_v9, 1920  ;;  %v2638_v48 = vadd.f32 %v2637_v16, %v2511_v40  ;;  %v2253_v31 = vsel %vm1869_vm13, %v1110_v3, 0.0  ;;  %v2378_v22 = vadd.f32 %v2377_v42, %v2251_v55  ;;  %1483 = vst [vmem:[%s3707_s28 + $0x178] sm:$0xff] %v1113_v62 }
 0x159   : > { %v2512_v52 = vmul.f32 %v2251_v55, %v2251_v55  ;;  %vm1874_vm4 = vcmp.lt.s32.totalorder %v4168_v18, 1920  ;;  %1481 = vst [vmem:[%s3707_s28 + $0x168] sm:$0xff] %v1105_v35  ;;  %v2252_v26 = vsel %vm1868_vm0, %v1105_v35, 0.0  ;;  %v4222_v53 = vadd.s32 %v3676_v6, %v1619_v15  ;;  %v4245_v15 = vpop.f32.mrb[37].mxu1 }
 0x15a   : > { %v4225_v24 = vadd.s32 %v3676_v6, %v1617_v58  ;;  %v1618_v60 = vadd.s32 424, %v3674_v5  ;;  %v2379_v59 = vadd.f32 %v2378_v22, %v2252_v26  ;;  %v2513_v61 = vmul.f32 %v2252_v26, %v2252_v26  ;;  %v4255_v3 = vpop.f32.mrb[38].mxu1 }
 0x15b   : > { %v2639_v28 = vadd.f32 %v2638_v48, %v2512_v52  ;;  %v4229_v37 = vadd.s32 %v3676_v6, %v1620_v34  ;;  %v2514_v19 = vmul.f32 %v2253_v31, %v2253_v31  ;;  %v2254_v0 = vsel %vm1870_vm15, %v1113_v62, 0.0  ;;  %v3134_v1 = vpop.f32.mrb[48].mxu0  ;;  %v4261_v34 = vpop.f32.mrb[39].mxu1 }
 0x15c   : > { %v1621_v56 = vadd.s32 448, %v3674_v5  ;;  %v4236_v47 = vadd.f32 %v4179_v20, %v4072_v45  ;;  %v2380_v11 = vadd.f32 %v2379_v59, %v2253_v31  ;;  %v1126_v63 = vadd.f32 %v4179_v20, %v3134_v1  ;;  %v1117_v14 = vpop.f32.mrb[49].mxu0 }
 0x15d   : > { %v2640_v12 = vadd.f32 %v2639_v28, %v2513_v61  ;;  %v4243_v32 = vadd.f32 %v4179_v20, %v4082_v7  ;;  %v1118_v51 = vadd.f32 %v4179_v20, %v1117_v14  ;;  %v3135_v45 = vpop.f32.mrb[50].mxu0  ;;  %vm1877_vm5 = vcmp.lt.s32.totalorder %v4222_v53, 1920 }
 0x15e   : > { %v4250_v4 = vadd.s32 %v3676_v6, %v1618_v60  ;;  %v1623_v46 = vadd.s32 464, %v3674_v5  ;;  %1524 = vst [vmem:[%s3707_s28 + $0x2c0] sm:$0xff] %v4236_v47  ;;  %v2515_v29 = vmul.f32 %v2254_v0, %v2254_v0  ;;  %v2381_v7 = vadd.f32 %v2380_v11, %v2254_v0  ;;  %1486 = vst [vmem:[%s3707_s28 + $0x190] sm:$0xff] %v1126_v63  ;;  %v1120_v58 = vpop.f32.mrb[51].mxu0 }
 0x15f   : > { %v2641_v30 = vadd.f32 %v2640_v12, %v2514_v19  ;;  %v1129_v17 = vadd.f32 %v4179_v20, %v3135_v45  ;;  %1527 = vst [vmem:[%s3707_s28 + $0x2d8] sm:$0xff] %v4243_v32  ;;  %1484 = vst [vmem:[%s3707_s28 + $0x180] sm:$0xff] %v1118_v51  ;;  %v2255_v40 = vsel %vm1871_vm2, %v1118_v51, 0.0  ;;  %v1121_v42 = vadd.f32 %v4179_v20, %v1120_v58  ;;  %v4294_v19 = vpop.f32.mrb[40].mxu1 }
 0x160   : > { %vm1875_vm6 = vcmp.lt.s32.totalorder %v4225_v24, 1920  ;;  %v1624_v16 = vadd.s32 472, %v3674_v5  ;;  %v2382_v44 = vadd.f32 %v2381_v7, %v2255_v40  ;;  %v2516_v55 = vmul.f32 %v2255_v40, %v2255_v40  ;;  %v4298_v12 = vpop.f32.mrb[41].mxu1 }
 0x161   : > { %v2642_v62 = vadd.f32 %v2641_v30, %v2515_v29  ;;  %1487 = vst [vmem:[%s3707_s28 + $0x198] sm:$0xff] %v1129_v17  ;;  %vm1878_vm7 = vcmp.lt.s32.totalorder %v4229_v37, 1920  ;;  %v4272_v35 = vadd.s32 %v3676_v6, %v1621_v56  ;;  %v2257_v48 = vsel %vm1873_vm1, %v1126_v63, 0.0  ;;  %1485 = vst [vmem:[%s3707_s28 + $0x188] sm:$0xff] %v1121_v42 }
 0x162   : > { %v2256_v27 = vsel %vm1872_vm3, %v1121_v42, 0.0  ;;  %vm1876_vm8 = vcmp.lt.s32.totalorder %v4250_v4, 1920  ;;  %v1622_v31 = vadd.s32 456, %v3674_v5  ;;  %v4282_v60 = vadd.s32 %v3676_v6, %v1623_v46  ;;  %v4311_v46 = vpop.f32.mrb[42].mxu1 }
 0x163   : > { %v2643_v22 = vadd.f32 %v2642_v62, %v2516_v55  ;;  %v2383_v52 = vadd.f32 %v2382_v44, %v2256_v27  ;;  %v2517_v26 = vmul.f32 %v2256_v27, %v2256_v27  ;;  %v2258_v28 = vsel %vm1874_vm4, %v1129_v17, 0.0  ;;  %v3138_v59 = vpop.f32.mrb[52].mxu0  ;;  %v4316_v40 = vpop.f32.mrb[43].mxu1 }
 0x164   : > { %v4287_v13 = vadd.s32 %v3676_v6, %v1624_v16  ;;  %v1625_v9 = vadd.s32 480, %v3674_v5  ;;  %v4292_v61 = vadd.f32 %v4179_v20, %v4087_v49  ;;  %v2518_v0 = vmul.f32 %v2257_v48, %v2257_v48  ;;  %v1133_v11 = vpop.f32.mrb[53].mxu0 }
 0x165   : > { %v2384_v1 = vadd.f32 %v2383_v52, %v2257_v48  ;;  %v2644_v56 = vadd.f32 %v2643_v22, %v2517_v26  ;;  %v1142_v18 = vadd.f32 %v4179_v20, %v3138_v59  ;;  %vm1879_vm9 = vcmp.lt.s32.totalorder %v4272_v35, 1920  ;;  %v3139_v14 = vpop.f32.mrb[54].mxu0 }
 0x166   : > { %v1134_v63 = vadd.f32 %v4179_v20, %v1133_v11  ;;  %v4302_v49 = vadd.s32 %v3676_v6, %v1622_v31  ;;  %v1627_v51 = vadd.s32 496, %v3674_v5  ;;  %1525 = vst [vmem:[%s3707_s28 + $0x2c8] sm:$0xff] %v4292_v61  ;;  %v4309_v45 = vadd.f32 %v4179_v20, %v4123_v36  ;;  %v1136_v58 = vpop.f32.mrb[55].mxu0 }
 0x167   : > { %v2519_v29 = vmul.f32 %v2258_v28, %v2258_v28  ;;  %v2385_v7 = vadd.f32 %v2384_v1, %v2258_v28  ;;  %v2645_v30 = vadd.f32 %v2644_v56, %v2518_v0  ;;  %1490 = vst [vmem:[%s3707_s28 + $0x1b0] sm:$0xff] %v1142_v18  ;;  %v1145_v17 = vadd.f32 %v4179_v20, %v3139_v14  ;;  %v4349_v1 = vpop.f32.mrb[44].mxu1 }
 0x168   : > { %vm1881_vm10 = vcmp.lt.s32.totalorder %v4282_v60, 1920  ;;  %1488 = vst [vmem:[%s3707_s28 + $0x1a0] sm:$0xff] %v1134_v63  ;;  %v2259_v36 = vsel %vm1875_vm6, %v1134_v63, 0.0  ;;  %v1137_v42 = vadd.f32 %v4179_v20, %v1136_v58  ;;  %v4323_v16 = vadd.s32 %v3676_v6, %v1625_v9  ;;  %1530 = vst [vmem:[%s3707_s28 + $0x2f0] sm:$0xff] %v4309_v45  ;;  %v4357_v14 = vpop.f32.mrb[45].mxu1 }
 0x169   : > { %v1628_v62 = vadd.s32 504, %v3674_v5  ;;  %v2646_v44 = vadd.f32 %v2645_v30, %v2519_v29  ;;  %v2261_v55 = vsel %vm1877_vm5, %v1142_v18, 0.0  ;;  %v2386_v48 = vadd.f32 %v2385_v7, %v2259_v36  ;;  %1491 = vst [vmem:[%s3707_s28 + $0x1b8] sm:$0xff] %v1145_v17 }
 0x16a   : > { %v2520_v27 = vmul.f32 %v2259_v36, %v2259_v36  ;;  %1489 = vst [vmem:[%s3707_s28 + $0x1a8] sm:$0xff] %v1137_v42  ;;  %v2260_v24 = vsel %vm1876_vm8, %v1137_v42, 0.0  ;;  %vm1882_vm11 = vcmp.lt.s32.totalorder %v4287_v13, 1920  ;;  %vm1880_vm12 = vcmp.lt.s32.totalorder %v4302_v49, 1920 }
 0x16b   : > { %v1626_v31 = vadd.s32 488, %v3674_v5  ;;  %v2387_v52 = vadd.f32 %v2386_v48, %v2260_v24  ;;  %v2521_v26 = vmul.f32 %v2260_v24, %v2260_v24  ;;  %v4338_v28 = vadd.s32 %v3676_v6, %v1627_v51  ;;  %v3142_v9 = vpop.f32.mrb[56].mxu0 }
 0x16c   : > { %v2647_v22 = vadd.f32 %v2646_v44, %v2520_v27  ;;  %v2522_v53 = vmul.f32 %v2261_v55, %v2261_v55  ;;  %v2262_v59 = vsel %vm1878_vm7, %v1145_v17, 0.0  ;;  %v4343_v4 = vadd.s32 %v3676_v6, %v1628_v62  ;;  %v1149_v63 = vpop.f32.mrb[57].mxu0  ;;  %v4367_v17 = vpop.f32.mrb[46].mxu1 }
 0x16d   : > { %v4347_v0 = vadd.f32 %v4179_v20, %v4130_v38  ;;  %v2388_v56 = vadd.f32 %v2387_v52, %v2261_v55  ;;  %v1158_v11 = vadd.f32 %v4179_v20, %v3142_v9  ;;  %vm1883_vm13 = vcmp.lt.s32.totalorder %v4323_v16, 1920  ;;  %v3143_v51 = vpop.f32.mrb[58].mxu0  ;;  %v4374_v44 = vpop.f32.mrb[47].mxu1 }
 0x16e   : > { %v2648_v18 = vadd.f32 %v2647_v22, %v2521_v26  ;;  %v4355_v37 = vadd.f32 %v4179_v20, %v4139_v50  ;;  %v1150_v38 = vadd.f32 %v4179_v20, %v1149_v63  ;;  %v4361_v29 = vadd.s32 %v3676_v6, %v1626_v31  ;;  %v1152_v62 = vpop.f32.mrb[59].mxu0 }
 0x16f   : > { %v1631_v7 = vadd.s32 528, %v3674_v5  ;;  %v1629_v30 = vadd.s32 512, %v3674_v5  ;;  %1528 = vst [vmem:[%s3707_s28 + $0x2e0] sm:$0xff] %v4347_v0  ;;  %v2523_v50 = vmul.f32 %v2262_v59, %v2262_v59  ;;  %v2389_v58 = vadd.f32 %v2388_v56, %v2262_v59  ;;  %1494 = vst [vmem:[%s3707_s28 + $0x1d0] sm:$0xff] %v1158_v11 }
 0x170   : > { %v2649_v36 = vadd.f32 %v2648_v18, %v2522_v53  ;;  %v1161_v42 = vadd.f32 %v4179_v20, %v3143_v51  ;;  %vm1885_vm14 = vcmp.lt.s32.totalorder %v4338_v28, 1920  ;;  %1531 = vst [vmem:[%s3707_s28 + $0x2f8] sm:$0xff] %v4355_v37  ;;  %1492 = vst [vmem:[%s3707_s28 + $0x1c0] sm:$0xff] %v1150_v38  ;;  %v2263_v55 = vsel %vm1879_vm9, %v1150_v38, 0.0  ;;  %v4406_v51 = vpop.f32.mrb[48].mxu1 }
 0x171   : > { %v1153_v48 = vadd.f32 %v4179_v20, %v1152_v62  ;;  %v1632_v27 = vadd.s32 536, %v3674_v5  ;;  %v1630_v24 = vadd.s32 520, %v3674_v5  ;;  %v2390_v22 = vadd.f32 %v2389_v58, %v2263_v55 }
 0x172   : > { %v2650_v31 = vadd.f32 %v2649_v36, %v2523_v50  ;;  %v2524_v52 = vmul.f32 %v2263_v55, %v2263_v55  ;;  %1495 = vst [vmem:[%s3707_s28 + $0x1d8] sm:$0xff] %v1161_v42  ;;  %vm1886_vm15 = vcmp.lt.s32.totalorder %v4343_v4, 1920  ;;  %v2265_v26 = vsel %vm1881_vm10, %v1158_v11, 0.0  ;;  %v4409_v36 = vpop.f32.mrb[49].mxu1 }
 0x173   : > { %1493 = vst [vmem:[%s3707_s28 + $0x1c8] sm:$0xff] %v1153_v48  ;;  %v2264_v35 = vsel %vm1880_vm12, %v1153_v48, 0.0  ;;  %vm1884_vm0 = vcmp.lt.s32.totalorder %v4361_v29, 1920  ;;  %v1759_v53 = vadd.s32 %v3676_v6, %v1629_v30  ;;  %v4392_v18 = vadd.s32 %v3676_v6, %v1631_v7  ;;  %v3146_v60 = vpop.f32.mrb[60].mxu0  ;;  %v4419_v48 = vpop.f32.mrb[50].mxu1 }
 0x174   : > { %v2651_v59 = vadd.f32 %v2650_v31, %v2524_v52  ;;  %v2391_v9 = vadd.f32 %v2390_v22, %v2264_v35  ;;  %v2525_v56 = vmul.f32 %v2264_v35, %v2264_v35  ;;  %v2266_v63 = vsel %vm1882_vm11, %v1161_v42, 0.0  ;;  %v1165_v58 = vpop.f32.mrb[61].mxu0 }
 0x175   : > { %v4397_v11 = vadd.s32 %v3676_v6, %v1632_v27  ;;  %v4400_v49 = vadd.s32 %v3676_v6, %v1630_v24  ;;  %v4404_v38 = vadd.f32 %v4179_v20, %v4145_v57  ;;  %v2526_v30 = vmul.f32 %v2265_v26, %v2265_v26  ;;  %v3147_v62 = vpop.f32.mrb[62].mxu0 }
 0x176   : > { %v2392_v7 = vadd.f32 %v2391_v9, %v2265_v26  ;;  %v2652_v50 = vadd.f32 %v2651_v59, %v2525_v56  ;;  %v1174_v13 = vadd.f32 %v4179_v20, %v3146_v60  ;;  %v1166_v42 = vadd.f32 %v4179_v20, %v1165_v58  ;;  %v1168_v52 = vpop.f32.mrb[63].mxu0  ;;  %v4424_v26 = vpop.f32.mrb[51].mxu1 }
 0x177   : > { %vm1887_vm1 = vcmp.lt.s32.totalorder %v1759_v53, 1920  ;;  %v1635_v55 = vadd.s32 560, %v3674_v5  ;;  %1529 = vst [vmem:[%s3707_s28 + $0x2e8] sm:$0xff] %v4404_v38  ;;  %v4417_v57 = vadd.f32 %v4179_v20, %v4185_v23  ;;  %v2527_v27 = vmul.f32 %v2266_v63, %v2266_v63 }
 0x178   : > { %v2393_v24 = vadd.f32 %v2392_v7, %v2266_v63  ;;  %v2653_v31 = vadd.f32 %v2652_v50, %v2526_v30  ;;  %1498 = vst [vmem:[%s3707_s28 + $0x1f0] sm:$0xff] %v1174_v13  ;;  %v1177_v22 = vadd.f32 %v4179_v20, %v3147_v62  ;;  %vm1889_vm2 = vcmp.lt.s32.totalorder %v4392_v18, 1920  ;;  %1496 = vst [vmem:[%s3707_s28 + $0x1e0] sm:$0xff] %v1166_v42 }
 0x179   : > { %v2267_v23 = vsel %vm1883_vm13, %v1166_v42, 0.0  ;;  %v1169_v35 = vadd.f32 %v4179_v20, %v1168_v52  ;;  %v1633_v59 = vadd.s32 544, %v3674_v5  ;;  %v1634_v9 = vadd.s32 552, %v3674_v5  ;;  %1534 = vst [vmem:[%s3707_s28 + $0x310] sm:$0xff] %v4417_v57 }
 0x17a   : > { %v2654_v56 = vadd.f32 %v2653_v31, %v2527_v27  ;;  %v2394_v63 = vadd.f32 %v2393_v24, %v2267_v23  ;;  %v2528_v60 = vmul.f32 %v2267_v23, %v2267_v23  ;;  %1499 = vst [vmem:[%s3707_s28 + $0x1f8] sm:$0xff] %v1177_v22  ;;  %vm1888_vm3 = vcmp.lt.s32.totalorder %v4400_v49, 1920  ;;  %v3335_v27 = vld [vmem:[%s3707_s28 + $0x200] sm:$0xff]  ;;  %v4457_v31 = vpop.f32.mrb[52].mxu1 }
 0x17b   : > { %v2269_v30 = vsel %vm1885_vm14, %v1174_v13, 0.0  ;;  %1497 = vst [vmem:[%s3707_s28 + $0x1e8] sm:$0xff] %v1169_v35  ;;  %v2268_v16 = vsel %vm1884_vm0, %v1169_v35, 0.0  ;;  %v4442_v7 = vadd.s32 %v3676_v6, %v1635_v55  ;;  %v1636_v50 = vadd.s32 568, %v3674_v5  ;;  %v4463_v53 = vpop.f32.mrb[53].mxu1 }
 0x17c   : > { %v2655_v58 = vadd.f32 %v2654_v56, %v2528_v60  ;;  %v2395_v42 = vadd.f32 %v2394_v63, %v2268_v16  ;;  %v2529_v62 = vmul.f32 %v2268_v16, %v2268_v16  ;;  %v2271_v24 = vsel %vm1887_vm1, %v3335_v27, 0.0  ;;  %v4473_v56 = vpop.f32.mrb[54].mxu1 }
 0x17d   : > { %v2270_v28 = vsel %vm1886_vm15, %v1177_v22, 0.0  ;;  %v1763_v13 = vadd.s32 %v3676_v6, %v1633_v59  ;;  %v4451_v29 = vadd.s32 %v3676_v6, %v1634_v9  ;;  %v4455_v55 = vadd.f32 %v4179_v20, %v4188_v2  ;;  %v4481_v16 = vpop.f32.mrb[55].mxu1 }
 0x17e   : > { %v2530_v52 = vmul.f32 %v2269_v30, %v2269_v30  ;;  %v2396_v23 = vadd.f32 %v2395_v42, %v2269_v30  ;;  %v2656_v35 = vadd.f32 %v2655_v58, %v2529_v62  ;;  %v4461_v4 = vadd.f32 %v4179_v20, %v4199_v39  ;;  %v3336_v58 = vld [vmem:[%s3707_s28 + $0x208] sm:$0xff] }
 0x17f   : > { %v2532_v22 = vmul.f32 %v2271_v24, %v2271_v24  ;;  %v1639_v59 = vadd.s32 592, %v3674_v5  ;;  %v1637_v2 = vadd.s32 576, %v3674_v5  ;;  %1532 = vst [vmem:[%s3707_s28 + $0x300] sm:$0xff] %v4455_v55  ;;  %v4471_v9 = vadd.f32 %v4179_v20, %v4204_v25 }
 0x180   : > { %v2531_v63 = vmul.f32 %v2270_v28, %v2270_v28  ;;  %v2397_v39 = vadd.f32 %v2396_v23, %v2270_v28  ;;  %v2657_v60 = vadd.f32 %v2656_v35, %v2530_v52  ;;  %1535 = vst [vmem:[%s3707_s28 + $0x318] sm:$0xff] %v4461_v4  ;;  %v4479_v30 = vadd.f32 %v4179_v20, %v4238_v8  ;;  %v3337_v8 = vld [vmem:[%s3707_s28 + $0x210] sm:$0xff] }
 0x181   : > { %vm1890_vm4 = vcmp.lt.s32.totalorder %v4397_v11, 1920  ;;  %v2272_v25 = vsel %vm1888_vm3, %v3336_v58, 0.0  ;;  %v1766_v42 = vadd.s32 %v3676_v6, %v1636_v50  ;;  %v1640_v62 = vadd.s32 600, %v3674_v5  ;;  %1533 = vst [vmem:[%s3707_s28 + $0x308] sm:$0xff] %v4471_v9 }
 0x182   : > { %4979 = vst [vmem:[#allocation8_spill] sm:$0xff] %v4479_v30  ;;  %v2658_v27 = vadd.f32 %v2657_v60, %v2531_v63  ;;  %v2398_v28 = vadd.f32 %v2397_v39, %v2271_v24  ;;  %vm1893_vm5 = vcmp.lt.s32.totalorder %v4442_v7, 1920  ;;  %vm1891_vm6 = vcmp.lt.s32.totalorder %v1763_v13, 1920  ;;  %1538 = vst [vmem:[%s3707_s28 + $0x330] sm:$0xff] %v4479_v30  ;;  %v3338_v13 = vld [vmem:[%s3707_s28 + $0x218] sm:$0xff]  ;;  %v3339_v60 = vld [vmem:[%s3707_s28 + $0x220] sm:$0xff] }
 0x183   : > { %v2273_v49 = vsel %vm1889_vm2, %v3337_v8, 0.0  ;;  %vm1892_vm7 = vcmp.lt.s32.totalorder %v4451_v29, 1920  ;;  %v4499_v50 = vadd.s32 %v3676_v6, %v1639_v59  ;;  %v1638_v52 = vadd.s32 584, %v3674_v5  ;;  %v4514_v8 = vpop.f32.mrb[56].mxu1 }
 0x184   : > { %v2659_v23 = vadd.f32 %v2658_v27, %v2532_v22  ;;  %v2399_v35 = vadd.f32 %v2398_v28, %v2272_v25  ;;  %v2533_v63 = vmul.f32 %v2272_v25, %v2272_v25  ;;  %v1767_v24 = vadd.s32 %v3676_v6, %v1637_v2  ;;  %v4520_v27 = vpop.f32.mrb[57].mxu1 }
 0x185   : > { %v2274_v39 = vsel %vm1890_vm4, %v3338_v13, 0.0  ;;  %v2275_v18 = vsel %vm1891_vm6, %v3339_v60, 0.0  ;;  %v4508_v58 = vadd.s32 %v3676_v6, %v1640_v62  ;;  %v4512_v59 = vadd.f32 %v4179_v20, %v4245_v15 }
 0x186   : > { %v2534_v22 = vmul.f32 %v2273_v49, %v2273_v49  ;;  %v2400_v25 = vadd.f32 %v2399_v35, %v2273_v49  ;;  %v2660_v2 = vadd.f32 %v2659_v23, %v2533_v63  ;;  %v4518_v11 = vadd.f32 %v4179_v20, %v4255_v3  ;;  %v4530_v49 = vpop.f32.mrb[58].mxu1 }
 0x187   : > { %vm1894_vm8 = vcmp.lt.s32.totalorder %v1766_v42, 1920  ;;  %v1768_v62 = vadd.s32 %v3676_v6, %v1638_v52  ;;  %v1641_v15 = vadd.s32 608, %v3674_v5  ;;  %1536 = vst [vmem:[%s3707_s28 + $0x320] sm:$0xff] %v4512_v59  ;;  %v4528_v28 = vadd.f32 %v4179_v20, %v4261_v34  ;;  %v4534_v13 = vpop.f32.mrb[59].mxu1  ;;  %v3340_v52 = vld [vmem:[%s3707_s28 + $0x228] sm:$0xff] }
 0x188   : > { %4980 = vst [vmem:[#allocation9_spill] sm:$0xff] %v4518_v11  ;;  %v2535_v23 = vmul.f32 %v2274_v39, %v2274_v39  ;;  %v2661_v3 = vadd.f32 %v2660_v2, %v2534_v22  ;;  %v2401_v35 = vadd.f32 %v2400_v25, %v2274_v39  ;;  %v2536_v63 = vmul.f32 %v2275_v18, %v2275_v18  ;;  %v3341_v2 = vld [vmem:[%s3707_s28 + $0x230] sm:$0xff] }
 0x189   : > { %4981 = vst [vmem:[#allocation10_spill] sm:$0xff] %v4528_v28  ;;  %1539 = vst [vmem:[%s3707_s28 + $0x338] sm:$0xff] %v4518_v11  ;;  %v2276_v60 = vsel %vm1892_vm7, %v3340_v52, 0.0  ;;  %vm1897_vm9 = vcmp.lt.s32.totalorder %v4499_v50, 1920  ;;  %v1643_v34 = vadd.s32 624, %v3674_v5  ;;  %v4545_v39 = vadd.f32 %v4179_v20, %v4294_v19 }
 0x18a   : > { %1537 = vst [vmem:[%s3707_s28 + $0x328] sm:$0xff] %v4528_v28  ;;  %v2402_v22 = vadd.f32 %v2401_v35, %v2275_v18  ;;  %v2662_v25 = vadd.f32 %v2661_v3, %v2535_v23  ;;  %vm1895_vm10 = vcmp.lt.s32.totalorder %v1767_v24, 1920  ;;  %vm1898_vm11 = vcmp.lt.s32.totalorder %v4508_v58, 1920  ;;  %v3342_v18 = vld [vmem:[%s3707_s28 + $0x238] sm:$0xff]  ;;  %v3343_v35 = vld [vmem:[%s3707_s28 + $0x240] sm:$0xff] }
 0x18b   : > { %4982 = vst [vmem:[#allocation11_spill] sm:$0xff] %v4545_v39  ;;  %v2277_v29 = vsel %vm1893_vm5, %v3341_v2, 0.0  ;;  %vm1896_vm12 = vcmp.lt.s32.totalorder %v1768_v62, 1920  ;;  %v1771_v52 = vadd.s32 %v3676_v6, %v1641_v15  ;;  %1542 = vst [vmem:[%s3707_s28 + $0x350] sm:$0xff] %v4545_v39  ;;  %v4556_v19 = vadd.f32 %v4179_v20, %v4298_v12  ;;  %v4566_v12 = vpop.f32.mrb[60].mxu1 }
 0x18c   : > { %v2663_v11 = vadd.f32 %v2662_v25, %v2536_v63  ;;  %v2278_v24 = vsel %vm1894_vm8, %v3342_v18, 0.0  ;;  %v2403_v23 = vadd.f32 %v2402_v22, %v2276_v60  ;;  %v2537_v3 = vmul.f32 %v2276_v60, %v2276_v60  ;;  %v4572_v22 = vpop.f32.mrb[61].mxu1  ;;  %v3344_v18 = vld [vmem:[%s3707_s28 + $0x250] sm:$0xff] }
 0x18d   : > { %4983 = vst [vmem:[#allocation12_spill] sm:$0xff] %v4556_v19  ;;  %v2279_v7 = vsel %vm1895_vm10, %v3343_v35, 0.0  ;;  %v1773_v2 = vadd.s32 %v3676_v6, %v1643_v34  ;;  %v1644_v30 = vadd.s32 632, %v3674_v5  ;;  %v1642_v15 = vadd.s32 616, %v3674_v5  ;;  %1540 = vst [vmem:[%s3707_s28 + $0x340] sm:$0xff] %v4556_v19  ;;  %v4581_v19 = vpop.f32.mrb[62].mxu1 }
 0x18e   : > { %v2538_v63 = vmul.f32 %v2277_v29, %v2277_v29  ;;  %v2404_v42 = vadd.f32 %v2403_v23, %v2277_v29  ;;  %v2664_v25 = vadd.f32 %v2663_v11, %v2537_v3  ;;  %v4570_v60 = vadd.f32 %v4179_v20, %v4311_v46  ;;  %v3345_v23 = vld [vmem:[%s3707_s28 + $0x248] sm:$0xff]  ;;  %v4587_v28 = vpop.f32.mrb[63].mxu1 }
 0x18f   : > { %v2539_v34 = vmul.f32 %v2278_v24, %v2278_v24  ;;  %v2281_v35 = vsel %vm1897_vm9, %v3344_v18, 0.0  ;;  %vm1899_vm13 = vcmp.lt.s32.totalorder %v1771_v52, 1920  ;;  %v4579_v39 = vadd.f32 %v4179_v20, %v4316_v40 }
 0x190   : > { %4984 = vst [vmem:[#allocation13_spill] sm:$0xff] %v4570_v60  ;;  %v2665_v11 = vadd.f32 %v2664_v25, %v2538_v63  ;;  %v2405_v29 = vadd.f32 %v2404_v42, %v2278_v24  ;;  %v2540_v46 = vmul.f32 %v2279_v7, %v2279_v7  ;;  %v2280_v3 = vsel %vm1896_vm12, %v3345_v23, 0.0  ;;  %1543 = vst [vmem:[%s3707_s28 + $0x358] sm:$0xff] %v4570_v60  ;;  %v3346_v25 = vld [vmem:[%s3707_s28 + $0x258] sm:$0xff] }
 0x191   : > { %4985 = vst [vmem:[#allocation14_spill] sm:$0xff] %v4579_v39  ;;  %v1774_v50 = vadd.s32 %v3676_v6, %v1644_v30  ;;  %v1772_v40 = vadd.s32 %v3676_v6, %v1642_v15  ;;  %v1645_v18 = vadd.s32 640, %v3674_v5  ;;  %1541 = vst [vmem:[%s3707_s28 + $0x348] sm:$0xff] %v4579_v39  ;;  %v4596_v24 = vadd.f32 %v4179_v20, %v4349_v1  ;;  %v3347_v39 = vld [vmem:[%s3707_s28 + $0x260] sm:$0xff] }
 0x192   : > { %v2406_v62 = vadd.f32 %v2405_v29, %v2279_v7  ;;  %v2666_v63 = vadd.f32 %v2665_v11, %v2539_v34  ;;  %vm1901_vm14 = vcmp.lt.s32.totalorder %v1773_v2, 1920  ;;  %v2542_v42 = vmul.f32 %v2281_v35, %v2281_v35 }
 0x193   : > { %4986 = vst [vmem:[#allocation15_spill] sm:$0xff] %v4596_v24  ;;  %v2282_v30 = vsel %vm1898_vm11, %v3346_v25, 0.0  ;;  %v2541_v23 = vmul.f32 %v2280_v3, %v2280_v3  ;;  %1546 = vst [vmem:[%s3707_s28 + $0x370] sm:$0xff] %v4596_v24  ;;  %v4605_v15 = vadd.f32 %v4179_v20, %v4357_v14  ;;  %v2283_v7 = vsel %vm1899_vm13, %v3347_v39, 0.0  ;;  %v3348_v39 = vld [vmem:[%s3707_s28 + $0x270] sm:$0xff] }
 0x194   : > { %v2667_v60 = vadd.f32 %v2666_v63, %v2540_v46  ;;  %v2407_v1 = vadd.f32 %v2406_v62, %v2280_v3  ;;  %v1647_v34 = vadd.s32 656, %v3674_v5  ;;  %vm1902_vm15 = vcmp.lt.s32.totalorder %v1774_v50, 1920 }
 0x195   : > { %vm1900_vm0 = vcmp.lt.s32.totalorder %v1772_v40, 1920  ;;  %v1775_v58 = vadd.s32 %v3676_v6, %v1645_v18  ;;  %v1646_v11 = vadd.s32 648, %v3674_v5  ;;  %1544 = vst [vmem:[%s3707_s28 + $0x360] sm:$0xff] %v4605_v15  ;;  %v2543_v29 = vmul.f32 %v2282_v30, %v2282_v30 }
 0x196   : > { %v2408_v14 = vadd.f32 %v2407_v1, %v2281_v35  ;;  %v2668_v25 = vadd.f32 %v2667_v60, %v2541_v23  ;;  %v4616_v52 = vadd.f32 %v4179_v20, %v4367_v17  ;;  %v2285_v46 = vsel %vm1901_vm14, %v3348_v39, 0.0  ;;  %v3349_v35 = vld [vmem:[%s3707_s28 + $0x268] sm:$0xff]  ;;  %v3350_v1 = vld [vmem:[%s3707_s28 + $0x278] sm:$0xff] }
 0x197   : > { %v2544_v3 = vmul.f32 %v2283_v7, %v2283_v7  ;;  %v1648_v62 = vadd.s32 664, %v3674_v5  ;;  %v4623_v18 = vadd.f32 %v4179_v20, %v4374_v44  ;;  %v2284_v60 = vsel %vm1900_vm0, %v3349_v35, 0.0 }
 0x198   : > { %v2669_v63 = vadd.f32 %v2668_v25, %v2542_v42  ;;  %v2409_v24 = vadd.f32 %v2408_v14, %v2282_v30  ;;  %v1777_v17 = vadd.s32 %v3676_v6, %v1647_v34  ;;  %1547 = vst [vmem:[%s3707_s28 + $0x378] sm:$0xff] %v4616_v52  ;;  %vm1903_vm1 = vcmp.lt.s32.totalorder %v1775_v58, 1920  ;;  %v3352_v58 = vld [vmem:[%s3707_s28 + $0x290] sm:$0xff] }
 0x199   : > { %v1776_v2 = vadd.s32 %v3676_v6, %v1646_v11  ;;  %v1649_v23 = vadd.s32 672, %v3674_v5  ;;  %1545 = vst [vmem:[%s3707_s28 + $0x368] sm:$0xff] %v4623_v18  ;;  %v4636_v44 = vadd.f32 %v4179_v20, %v4406_v51  ;;  %v2546_v42 = vmul.f32 %v2285_v46, %v2285_v46 }
 0x19a   : > { %v2410_v40 = vadd.f32 %v2409_v24, %v2283_v7  ;;  %v2670_v30 = vadd.f32 %v2669_v63, %v2543_v29  ;;  %v2286_v34 = vsel %vm1902_vm15, %v3350_v1, 0.0  ;;  %v2545_v14 = vmul.f32 %v2284_v60, %v2284_v60  ;;  %v3351_v24 = vld [vmem:[%s3707_s28 + $0x280] sm:$0xff] }
 0x19b   : > { %v1778_v25 = vadd.s32 %v3676_v6, %v1648_v62  ;;  %v1651_v11 = vadd.s32 688, %v3674_v5  ;;  %1550 = vst [vmem:[%s3707_s28 + $0x390] sm:$0xff] %v4636_v44  ;;  %v4646_v39 = vadd.f32 %v4179_v20, %v4409_v36  ;;  %vm1905_vm2 = vcmp.lt.s32.totalorder %v1777_v17, 1920 }
 0x19c   : > { %v2671_v51 = vadd.f32 %v2670_v30, %v2544_v3  ;;  %v2411_v35 = vadd.f32 %v2410_v40, %v2284_v60  ;;  %v2287_v50 = vsel %vm1903_vm1, %v3351_v24, 0.0  ;;  %vm1904_vm3 = vcmp.lt.s32.totalorder %v1776_v2, 1920 }
 0x19d   : > { %v1779_v7 = vadd.s32 %v3676_v6, %v1649_v23  ;;  %v1652_v29 = vadd.s32 696, %v3674_v5  ;;  %v1650_v62 = vadd.s32 680, %v3674_v5  ;;  %1548 = vst [vmem:[%s3707_s28 + $0x380] sm:$0xff] %v4646_v39  ;;  %v2547_v63 = vmul.f32 %v2286_v34, %v2286_v34 }
 0x19e   : > { %v2412_v1 = vadd.f32 %v2411_v35, %v2285_v46  ;;  %v2672_v36 = vadd.f32 %v2671_v51, %v2545_v14  ;;  %v4657_v3 = vadd.f32 %v4179_v20, %v4419_v48  ;;  %v2289_v60 = vsel %vm1905_vm2, %v3352_v58, 0.0 }
 0x19f   : > { %vm1906_vm4 = vcmp.lt.s32.totalorder %v1778_v25, 1920  ;;  %v1781_v17 = vadd.s32 %v3676_v6, %v1651_v11  ;;  %v4663_v23 = vadd.f32 %v4179_v20, %v4424_v26  ;;  %v2548_v24 = vmul.f32 %v2287_v50, %v2287_v50  ;;  %v3353_v11 = vld [vmem:[%s3707_s28 + $0x298] sm:$0xff] }
 0x1a0   : > { %v2673_v40 = vadd.f32 %v2672_v36, %v2546_v42  ;;  %v2413_v30 = vadd.f32 %v2412_v1, %v2286_v34  ;;  %v2288_v46 = vsel %vm1904_vm3, %v4067_v54, 0.0  ;;  %1551 = vst [vmem:[%s3707_s28 + $0x398] sm:$0xff] %v4657_v3  ;;  %vm1907_vm5 = vcmp.lt.s32.totalorder %v1779_v7, 1920 }
 0x1a1   : > { %v1782_v48 = vadd.s32 %v3676_v6, %v1652_v29  ;;  %v1780_v14 = vadd.s32 %v3676_v6, %v1650_v62  ;;  %1549 = vst [vmem:[%s3707_s28 + $0x388] sm:$0xff] %v4663_v23  ;;  %v4675_v26 = vadd.f32 %v4179_v20, %v4457_v31  ;;  %v2290_v2 = vsel %vm1906_vm4, %v3353_v11, 0.0 }
 0x1a2   : > { %v2414_v42 = vadd.f32 %v2413_v30, %v2287_v50  ;;  %v2674_v34 = vadd.f32 %v2673_v40, %v2547_v63  ;;  %v1653_v54 = vadd.s32 704, %v3674_v5  ;;  %v2550_v51 = vmul.f32 %v2289_v60, %v2289_v60 }
 0x1a3   : > { %v2549_v35 = vmul.f32 %v2288_v46, %v2288_v46  ;;  %vm1909_vm6 = vcmp.lt.s32.totalorder %v1781_v17, 1920  ;;  %1554 = vst [vmem:[%s3707_s28 + $0x3b0] sm:$0xff] %v4675_v26  ;;  %v4684_v29 = vadd.f32 %v4179_v20, %v4463_v53  ;;  %v2291_v50 = vsel %vm1907_vm5, %v4121_v33, 0.0 }
 0x1a4   : > { %v2675_v62 = vadd.f32 %v2674_v34, %v2548_v24  ;;  %v2415_v31 = vadd.f32 %v2414_v42, %v2288_v46  ;;  %v1655_v25 = vadd.s32 720, %v3674_v5  ;;  %v2551_v63 = vmul.f32 %v2290_v2, %v2290_v2 }
 0x1a5   : > { %vm1910_vm7 = vcmp.lt.s32.totalorder %v1782_v48, 1920  ;;  %vm1908_vm8 = vcmp.lt.s32.totalorder %v1780_v14, 1920  ;;  %v1654_v1 = vadd.s32 712, %v3674_v5  ;;  %1552 = vst [vmem:[%s3707_s28 + $0x3a0] sm:$0xff] %v4684_v29  ;;  %v1783_v53 = vadd.s32 %v3676_v6, %v1653_v54 }
 0x1a6   : > { %v2416_v36 = vadd.f32 %v2415_v31, %v2289_v60  ;;  %v2676_v58 = vadd.f32 %v2675_v62, %v2549_v35  ;;  %v4695_v40 = vadd.f32 %v4179_v20, %v4473_v56  ;;  %v2293_v33 = vsel %vm1909_vm6, %v4080_v41, 0.0 }
 0x1a7   : > { %v2552_v7 = vmul.f32 %v2291_v50, %v2291_v50  ;;  %v1656_v30 = vadd.s32 728, %v3674_v5  ;;  %v4702_v24 = vadd.f32 %v4179_v20, %v4481_v16  ;;  %v2294_v48 = vsel %vm1910_vm7, %v4128_v10, 0.0 }
 0x1a8   : > { %v2677_v46 = vadd.f32 %v2676_v58, %v2550_v51  ;;  %v2417_v60 = vadd.f32 %v2416_v36, %v2290_v2  ;;  %v1785_v42 = vadd.s32 %v3676_v6, %v1655_v25  ;;  %1555 = vst [vmem:[%s3707_s28 + $0x3b8] sm:$0xff] %v4695_v40  ;;  %v2292_v56 = vsel %vm1908_vm8, %v4183_v21, 0.0 }
 0x1a9   : > { %v1784_v41 = vadd.s32 %v3676_v6, %v1654_v1  ;;  %v1657_v17 = vadd.s32 736, %v3674_v5  ;;  %1553 = vst [vmem:[%s3707_s28 + $0x3a8] sm:$0xff] %v4702_v24  ;;  %v4716_v16 = vadd.f32 %v4179_v20, %v4514_v8  ;;  %vm1911_vm9 = vcmp.lt.s32.totalorder %v1783_v53, 1920 }
 0x1aa   : > { %v2418_v34 = vadd.f32 %v2417_v60, %v2291_v50  ;;  %v2678_v10 = vadd.f32 %v2677_v46, %v2551_v63  ;;  %v2554_v11 = vmul.f32 %v2293_v33, %v2293_v33  ;;  %v2555_v2 = vmul.f32 %v2294_v48, %v2294_v48 }
 0x1ab   : > { %v1786_v54 = vadd.s32 %v3676_v6, %v1656_v30  ;;  %1558 = vst [vmem:[%s3707_s28 + $0x3d0] sm:$0xff] %v4716_v16  ;;  %v4723_v21 = vadd.f32 %v4179_v20, %v4520_v27  ;;  %v2553_v35 = vmul.f32 %v2292_v56, %v2292_v56  ;;  %vm1913_vm10 = vcmp.lt.s32.totalorder %v1785_v42, 1920 }
 0x1ac   : > { %v2679_v14 = vadd.f32 %v2678_v10, %v2552_v7  ;;  %v2419_v51 = vadd.f32 %v2418_v34, %v2292_v56  ;;  %v2295_v8 = vsel %vm1911_vm9, %v4236_v47, 0.0  ;;  %vm1912_vm11 = vcmp.lt.s32.totalorder %v1784_v41, 1920 }
 0x1ad   : > { %v1787_v62 = vadd.s32 %v3676_v6, %v1657_v17  ;;  %v1658_v31 = vadd.s32 744, %v3674_v5  ;;  %1556 = vst [vmem:[%s3707_s28 + $0x3c0] sm:$0xff] %v4723_v21  ;;  %v1659_v27 = vadd.s32 752, %v3674_v5  ;;  %v4733_v63 = vadd.f32 %v4179_v20, %v4530_v49 }
 0x1ae   : > { %v2420_v50 = vadd.f32 %v2419_v51, %v2293_v33  ;;  %v2680_v25 = vadd.f32 %v2679_v14, %v2553_v35  ;;  %v2297_v1 = vsel %vm1913_vm10, %v4197_v43, 0.0  ;;  %vm1914_vm12 = vcmp.lt.s32.totalorder %v1786_v54, 1920 }
 0x1af   : > { %v1660_v47 = vadd.s32 760, %v3674_v5  ;;  %v4739_v36 = vadd.f32 %v4179_v20, %v4534_v13  ;;  %v2556_v33 = vmul.f32 %v2295_v8, %v2295_v8  ;;  %v2296_v7 = vsel %vm1912_vm11, %v4292_v61, 0.0  ;;  %1559 = vst [vmem:[%s3707_s28 + $0x3d8] sm:$0xff] %v4733_v63 }
 0x1b0   : > { %v2681_v58 = vadd.f32 %v2680_v25, %v2554_v11  ;;  %v2421_v53 = vadd.f32 %v2420_v50, %v2294_v48  ;;  %vm1915_vm13 = vcmp.lt.s32.totalorder %v1787_v62, 1920  ;;  %v1788_v43 = vadd.s32 %v3676_v6, %v1658_v31 }
 0x1b1   : > { %v1661_v49 = vadd.s32 768, %v3674_v5  ;;  %1557 = vst [vmem:[%s3707_s28 + $0x3c8] sm:$0xff] %v4739_v36  ;;  %v4750_v13 = vadd.f32 %v4179_v20, %v4566_v12  ;;  %v2298_v60 = vsel %vm1914_vm12, %v4243_v32, 0.0  ;;  %v1789_v61 = vadd.s32 %v3676_v6, %v1659_v27 }
 0x1b2   : > { %v2422_v30 = vadd.f32 %v2421_v53, %v2295_v8  ;;  %v2682_v46 = vadd.f32 %v2681_v58, %v2555_v2  ;;  %v2558_v48 = vmul.f32 %v2297_v1, %v2297_v1  ;;  %v4755_v42 = vadd.s32 %v3676_v6, %v1660_v47 }
 0x1b3   : > { %1562 = vst [vmem:[%s3707_s28 + $0x3f0] sm:$0xff] %v4750_v13  ;;  %v4761_v56 = vadd.f32 %v4179_v20, %v4572_v22  ;;  %v2557_v17 = vmul.f32 %v2296_v7, %v2296_v7  ;;  %v2299_v32 = vsel %vm1915_vm13, %v4347_v0, 0.0  ;;  %v2559_v34 = vmul.f32 %v2298_v60, %v2298_v60 }
 0x1b4   : > { %v2683_v12 = vadd.f32 %v2682_v46, %v2556_v33  ;;  %v2423_v41 = vadd.f32 %v2422_v30, %v2296_v7  ;;  %vm1916_vm14 = vcmp.lt.s32.totalorder %v1788_v43, 1920  ;;  %v1791_v10 = vadd.s32 %v3676_v6, %v1661_v49 }
 0x1b5   : > { %v1662_v11 = vadd.s32 776, %v3674_v5  ;;  %1560 = vst [vmem:[%s3707_s28 + $0x3e0] sm:$0xff] %v4761_v56  ;;  %vm1917_vm15 = vcmp.lt.s32.totalorder %v1789_v61, 1920  ;;  %v4773_v54 = vadd.f32 %v4179_v20, %v4581_v19  ;;  %v2560_v0 = vmul.f32 %v2299_v32, %v2299_v32 }
 0x1b6   : > { %v2424_v2 = vadd.f32 %v2423_v41, %v2297_v1  ;;  %v2684_v22 = vadd.f32 %v2683_v12, %v2557_v17  ;;  %vm1918_vm0 = vcmp.lt.s32.totalorder %v4755_v42, 1920  ;;  %v1663_v14 = vadd.s32 784, %v3674_v5 }
 0x1b7   : > { %v4786_v51 = vadd.f32 %v4179_v20, %v4587_v28  ;;  %v2300_v8 = vsel %vm1916_vm14, %v4404_v38, 0.0  ;;  %v1664_v62 = vadd.s32 792, %v3674_v5  ;;  %1563 = vst [vmem:[%s3707_s28 + $0x3f8] sm:$0xff] %v4773_v54  ;;  %vm1919_vm1 = vcmp.lt.s32.totalorder %v1791_v10, 1920 }
 0x1b8   : > { %v2685_v19 = vadd.f32 %v2684_v22, %v2558_v48  ;;  %v2425_v35 = vadd.f32 %v2424_v2, %v2298_v60  ;;  %v1792_v31 = vadd.s32 %v3676_v6, %v1662_v11  ;;  %v2301_v20 = vsel %vm1917_vm15, %v4309_v45, 0.0 }
 0x1b9   : > { %1561 = vst [vmem:[%s3707_s28 + $0x3e8] sm:$0xff] %v4786_v51  ;;  %v1665_v25 = vadd.s32 800, %v3674_v5 }
 0x1ba   : > { %v2426_v28 = vadd.f32 %v2425_v35, %v2299_v32  ;;  %v2686_v50 = vadd.f32 %v2685_v19, %v2559_v34 }
 0x1bb   : > { %3367 = shalt.err (!%p3364_p3)
}
 0x1bc   : > { %s3368_s22 = scalar_lea.hbm %s4778_s9, 16384  ;;  %s3372_s28 = scalar_lea.hbm %s4967_s3, 32768 }
 0x1bd   : > { %p3369_p4 = scmp.ne.s32.totalorder %s4778_s9, %s3368_s22  ;;  %p3373_p9 = scmp.lt.u32.totalorder %s4778_s9, %s4967_s3 }
 0x1be   : > { %p3374_p10 = scmp.lt.u32.totalorder %s3372_s28, %s3368_s22  ;;  %p3376_p12 = scmp.lt.u32.totalorder %s3368_s22, %s4778_s9 }
 0x1bf   : > { %p3370_p7 = pnand %p3369_p4, %p3517_p5 }
 0x1c0   : > { %p3375_p11 = por %p3374_p10, %p3373_p9 }
 0x1c1   : > { %p3371_p8 = pneg %p3370_p7 }
 0x1c2   : > { %p3377_p13 = por %p3376_p12, %p3375_p11 }
 0x1c4   : > { %p3378_p0 = pnand %p3377_p13, %p3371_p8 }
 0x1c6   : > { %3381 = shalt.err (!%p3378_p0)
}
 0x1c7   : > { %s3451_s5 = smov 128   ;;  %s3452_s7 = smov 8   ;;  %v2302_v45 = vsel %vm1918_vm0, %v4355_v37, 0.0  ;;  %v2561_v38 = vmul.f32 %v2300_v8, %v2300_v8  ;;  %v1793_v27 = vadd.s32 %v3676_v6, %v1663_v14  ;;  %v2687_v1 = vadd.f32 %v2686_v50, %v2560_v0 }
 0x1c8   : > { %3220 = dma.vmem_to_hbm [thread:$0]  (%p3517_p5), %s4780_s6, 16384, %s4778_s9, %s2733_s10, %s3451_s5, %s3451_s5, %s3452_s7   ;;  %v2427_v47 = vadd.f32 %v2426_v28, %v2300_v8  ;;  %v2303_v58 = vsel %vm1919_vm1, %v4455_v55, 0.0  ;;  %v1794_v53 = vadd.s32 %v3676_v6, %v1664_v62  ;;  %v2562_v33 = vmul.f32 %v2301_v20, %v2301_v20 }
 0x1c9   : > { %vm1920_vm2 = vcmp.lt.s32.totalorder %v1792_v31, 1920  ;;  %v2688_v43 = vadd.f32 %v2687_v1, %v2561_v38  ;;  %v1795_v49 = vadd.s32 %v3676_v6, %v1665_v25  ;;  %v1666_v30 = vadd.s32 808, %v3674_v5  ;;  %s2863_s6 = sshll.u32 %s3679_s20, 1  ;;  %s3004_s8 = sshll.u32 %s3500_s19, 5 }
 0x1ca   : > { %v2428_v7 = vadd.f32 %v2427_v47, %v2301_v20  ;;  %v2563_v46 = vmul.f32 %v2302_v45, %v2302_v45  ;;  %vm1921_vm3 = vcmp.lt.s32.totalorder %v1793_v27, 1920  ;;  %v2564_v37 = vmul.f32 %v2303_v58, %v2303_v58  ;;  %s202_s9 = scalar_lea.vmem [#allocation4], %s2863_s6  ;;  %s4921_s13 = scalar_lea.hbm %s4968_s4, %s3004_s8 }
 0x1cb   : > { %v1667_v60 = vadd.s32 816, %v3674_v5  ;;  %v2689_v61 = vadd.f32 %v2688_v43, %v2562_v33  ;;  %vm1922_vm4 = vcmp.lt.s32.totalorder %v1794_v53, 1920  ;;  %v1668_v55 = vadd.s32 824, %v3674_v5  ;;  %v4989_v33 = vld [vmem:[#allocation9_spill] sm:$0xff]  ;;  %s2767_s10 = sshll.u32 %s202_s9, 4  ;;  %s2738_s14 = scalar_lea.sflag [#allocation5], %s3679_s20  ;;  %s4923_s10 = int_to_ptr.vmem [resolvable:$true] %s2767_s10 }
 0x1cc   : > { %v2429_v48 = vadd.f32 %v2428_v7, %v2302_v45  ;;  %v2304_v42 = vsel %vm1920_vm2, %v4471_v9, 0.0  ;;  %v1669_v12 = vadd.s32 832, %v3674_v5  ;;  %vm1923_vm5 = vcmp.lt.s32.totalorder %v1795_v49, 1920  ;;  %v4987_v45 = vld [vmem:[#allocation10_spill] sm:$0xff]  ;;  %s3382_s22 = scalar_lea.vmem %s4923_s10, 32  ;;  %s3453_s19 = smov [#allocation4]  }
 0x1cd   : > { %v2690_v17 = vadd.f32 %v2689_v61, %v2563_v46  ;;  %v1796_v32 = vadd.s32 %v3676_v6, %v1666_v30  ;;  %v2305_v34 = vsel %vm1921_vm3, %v4417_v57, 0.0  ;;  %v2306_v10 = vsel %vm1922_vm4, %v4461_v4, 0.0  ;;  %p3383_p1 = scmp.ne.s32.totalorder %s4923_s10, %s3382_s22  ;;  %s3386_s23 = sshll.u32 %s3453_s19, 4  ;;  %s3387_s23 = int_to_ptr.vmem [resolvable:$false] %s3386_s23 }
 0x1ce   : > { %v2430_v41 = vadd.f32 %v2429_v48, %v2303_v58  ;;  %v1797_v11 = vadd.s32 %v3676_v6, %v1667_v60  ;;  %v2565_v0 = vmul.f32 %v2304_v42, %v2304_v42  ;;  %v1798_v14 = vadd.s32 %v3676_v6, %v1668_v55  ;;  %v4988_v58 = vld [vmem:[#allocation8_spill] sm:$0xff]  ;;  %s3388_s27 = scalar_lea.vmem %s3387_s23, 64  ;;  %p3389_p4 = scmp.lt.s32.totalorder %s4923_s10, %s3387_s23 }
 0x1cf   : > { %v2691_v2 = vadd.f32 %v2690_v17, %v2564_v37  ;;  %v2307_v9 = vsel %vm1923_vm5, %v4512_v59, 0.0  ;;  %v1799_v19 = vadd.s32 %v3676_v6, %v1669_v12  ;;  %v1670_v35 = vadd.s32 840, %v3674_v5  ;;  %v4990_v60 = vld [vmem:[#allocation12_spill] sm:$0xff]  ;;  %p3384_p2 = pnand %p3383_p1, %p3517_p5  ;;  %p3390_p7 = scmp.lt.s32.totalorder %s3388_s27, %s3382_s22 }
 0x1d0   : > { %v2431_v22 = vadd.f32 %v2430_v41, %v2304_v42  ;;  %v2566_v8 = vmul.f32 %v2305_v34, %v2305_v34  ;;  %vm1924_vm6 = vcmp.lt.s32.totalorder %v1796_v32, 1920  ;;  %v2567_v57 = vmul.f32 %v2306_v10, %v2306_v10 }
 0x1d1   : > { %v2692_v31 = vadd.f32 %v2691_v2, %v2565_v0  ;;  %vm1925_vm7 = vcmp.lt.s32.totalorder %v1797_v11, 1920  ;;  %v1671_v4 = vadd.s32 848, %v3674_v5  ;;  %v1672_v20 = vadd.s32 856, %v3674_v5  ;;  %v4991_v2 = vld [vmem:[#allocation14_spill] sm:$0xff]  ;;  %p3385_p3 = pneg %p3384_p2  ;;  %p3391_p8 = por %p3390_p7, %p3389_p4 }
 0x1d2   : > { %v2432_v62 = vadd.f32 %v2431_v22, %v2305_v34  ;;  %v2568_v25 = vmul.f32 %v2307_v9, %v2307_v9  ;;  %vm1926_vm8 = vcmp.lt.s32.totalorder %v1798_v14, 1920  ;;  %v2308_v59 = vsel %vm1924_vm6, %v4987_v45, 0.0 }
 0x1d3   : > { %v2693_v28 = vadd.f32 %v2692_v31, %v2566_v8  ;;  %vm1927_vm9 = vcmp.lt.s32.totalorder %v1799_v19, 1920  ;;  %v1800_v38 = vadd.s32 %v3676_v6, %v1670_v35  ;;  %v1673_v27 = vadd.s32 864, %v3674_v5  ;;  %v4993_v31 = vld [vmem:[#allocation13_spill] sm:$0xff]  ;;  %p3392_p9 = pnand %p3391_p8, %p3385_p3 }
 0x1d4   : > { %v2433_v50 = vadd.f32 %v2432_v62, %v2306_v10  ;;  %v2309_v53 = vsel %vm1925_vm7, %v4988_v58, 0.0  ;;  %v2310_v7 = vsel %vm1926_vm8, %v4989_v33, 0.0  ;;  %v1801_v43 = vadd.s32 %v3676_v6, %v1671_v4 }
 0x1d5   : > { %v2694_v47 = vadd.f32 %v2693_v28, %v2567_v57  ;;  %v1802_v49 = vadd.s32 %v3676_v6, %v1672_v20  ;;  %v2569_v37 = vmul.f32 %v2308_v59, %v2308_v59  ;;  %v2311_v61 = vsel %vm1927_vm9, %v4990_v60, 0.0 }
 0x1d6   : > { %v2434_v1 = vadd.f32 %v2433_v50, %v2307_v9  ;;  %vm1928_vm10 = vcmp.lt.s32.totalorder %v1800_v38, 1920  ;;  %v1803_v48 = vadd.s32 %v3676_v6, %v1673_v27  ;;  %v1674_v55 = vadd.s32 872, %v3674_v5  ;;  %v4992_v9 = vld [vmem:[#allocation11_spill] sm:$0xff] }
 0x1d7   : > { %v2695_v30 = vadd.f32 %v2694_v47, %v2568_v25  ;;  %v2570_v42 = vmul.f32 %v2309_v53, %v2309_v53  ;;  %v2571_v12 = vmul.f32 %v2310_v7, %v2310_v7  ;;  %vm1929_vm11 = vcmp.lt.s32.totalorder %v1801_v43, 1920 }
 0x1d8   : > { %v2435_v46 = vadd.f32 %v2434_v1, %v2308_v59  ;;  %v2572_v32 = vmul.f32 %v2311_v61, %v2311_v61  ;;  %vm1930_vm12 = vcmp.lt.s32.totalorder %v1802_v49, 1920  ;;  %v1675_v34 = vadd.s32 880, %v3674_v5 }
 0x1d9   : > { %v2696_v17 = vadd.f32 %v2695_v30, %v2569_v37  ;;  %v2312_v22 = vsel %vm1928_vm10, %v4991_v2, 0.0  ;;  %v1676_v0 = vadd.s32 888, %v3674_v5  ;;  %vm1931_vm13 = vcmp.lt.s32.totalorder %v1803_v48, 1920 }
 0x1da   : > { %v2436_v41 = vadd.f32 %v2435_v46, %v2309_v53  ;;  %v1804_v14 = vadd.s32 %v3676_v6, %v1674_v55  ;;  %v2313_v19 = vsel %vm1929_vm11, %v4992_v9, 0.0  ;;  %v1677_v62 = vadd.s32 896, %v3674_v5 }
 0x1db   : > { %v2697_v10 = vadd.f32 %v2696_v17, %v2570_v42  ;;  %v2314_v57 = vsel %vm1930_vm12, %v4993_v31, 0.0  ;;  %v2573_v4 = vmul.f32 %v2312_v22, %v2312_v22  ;;  %v1805_v20 = vadd.s32 %v3676_v6, %v1675_v34 }
 0x1dc   : > { %v2437_v11 = vadd.f32 %v2436_v41, %v2310_v7  ;;  %v2315_v25 = vsel %vm1931_vm13, %v4605_v15, 0.0  ;;  %v1806_v45 = vadd.s32 %v3676_v6, %v1676_v0  ;;  %v2574_v59 = vmul.f32 %v2313_v19, %v2313_v19 }
 0x1dd   : > { %v2698_v8 = vadd.f32 %v2697_v10, %v2571_v12  ;;  %vm1932_vm14 = vcmp.lt.s32.totalorder %v1804_v14, 1920  ;;  %v1807_v1 = vadd.s32 %v3676_v6, %v1677_v62  ;;  %v1678_v47 = vadd.s32 904, %v3674_v5 }
 0x1de   : > { %v2438_v35 = vadd.f32 %v2437_v11, %v2311_v61  ;;  %v2575_v58 = vmul.f32 %v2314_v57, %v2314_v57  ;;  %vm1933_vm15 = vcmp.lt.s32.totalorder %v1805_v20, 1920  ;;  %v2576_v53 = vmul.f32 %v2315_v25, %v2315_v25  ;;  %v4994_v61 = vld [vmem:[#allocation15_spill] sm:$0xff] }
 0x1df   : > { %v2699_v28 = vadd.f32 %v2698_v8, %v2572_v32  ;;  %v1679_v33 = vadd.s32 912, %v3674_v5  ;;  %vm1934_vm0 = vcmp.lt.s32.totalorder %v1806_v45, 1920  ;;  %v1680_v15 = vadd.s32 920, %v3674_v5 }
 0x1e0   : > { %v2439_v50 = vadd.f32 %v2438_v35, %v2312_v22  ;;  %v2316_v49 = vsel %vm1932_vm14, %v4623_v18, 0.0  ;;  %v1681_v30 = vadd.s32 928, %v3674_v5  ;;  %vm1935_vm1 = vcmp.lt.s32.totalorder %v1807_v1, 1920 }
 0x1e1   : > { %v2700_v27 = vadd.f32 %v2699_v28, %v2573_v4  ;;  %v1808_v60 = vadd.s32 %v3676_v6, %v1678_v47  ;;  %v2317_v48 = vsel %vm1933_vm15, %v4994_v61, 0.0  ;;  %v2318_v55 = vsel %vm1934_vm0, %v4616_v52, 0.0 }
 0x1e2   : > { %v2440_v38 = vadd.f32 %v2439_v50, %v2313_v19  ;;  %v1809_v42 = vadd.s32 %v3676_v6, %v1679_v33  ;;  %v2577_v17 = vmul.f32 %v2316_v49, %v2316_v49  ;;  %v1810_v32 = vadd.s32 %v3676_v6, %v1680_v15 }
 0x1e3   : > { %v2701_v7 = vadd.f32 %v2700_v27, %v2574_v59  ;;  %v2319_v18 = vsel %vm1935_vm1, %v4646_v39, 0.0  ;;  %v1811_v34 = vadd.s32 %v3676_v6, %v1681_v30  ;;  %v1682_v10 = vadd.s32 936, %v3674_v5 }
 0x1e4   : > { %v2441_v43 = vadd.f32 %v2440_v38, %v2314_v57  ;;  %v2578_v11 = vmul.f32 %v2317_v48, %v2317_v48  ;;  %vm1936_vm2 = vcmp.lt.s32.totalorder %v1808_v60, 1920  ;;  %v2579_v0 = vmul.f32 %v2318_v55, %v2318_v55 }
 0x1e5   : > { %v2702_v37 = vadd.f32 %v2701_v7, %v2575_v58  ;;  %vm1937_vm3 = vcmp.lt.s32.totalorder %v1809_v42, 1920  ;;  %v1683_v52 = vadd.s32 944, %v3674_v5  ;;  %v1684_v14 = vadd.s32 952, %v3674_v5 }
 0x1e6   : > { %v2442_v46 = vadd.f32 %v2441_v43, %v2315_v25  ;;  %v2580_v35 = vmul.f32 %v2319_v18, %v2319_v18  ;;  %vm1938_vm4 = vcmp.lt.s32.totalorder %v1810_v32, 1920  ;;  %v2320_v39 = vsel %vm1936_vm2, %v4663_v23, 0.0 }
 0x1e7   : > { %v2703_v12 = vadd.f32 %v2702_v37, %v2576_v53  ;;  %vm1939_vm5 = vcmp.lt.s32.totalorder %v1811_v34, 1920  ;;  %v1812_v8 = vadd.s32 %v3676_v6, %v1682_v10  ;;  %v1685_v62 = vadd.s32 960, %v3674_v5 }
 0x1e8   : > { %v2443_v41 = vadd.f32 %v2442_v46, %v2316_v49  ;;  %v2321_v4 = vsel %vm1937_vm3, %v4636_v44, 0.0  ;;  %v2322_v20 = vsel %vm1938_vm4, %v4657_v3, 0.0  ;;  %v1813_v28 = vadd.s32 %v3676_v6, %v1683_v52 }
 0x1e9   : > { %v2704_v22 = vadd.f32 %v2703_v12, %v2577_v17  ;;  %v1814_v50 = vadd.s32 %v3676_v6, %v1684_v14  ;;  %v2581_v59 = vmul.f32 %v2320_v39, %v2320_v39  ;;  %v2323_v23 = vsel %vm1939_vm5, %v4684_v29, 0.0 }
 0x1ea   : > { %v2444_v2 = vadd.f32 %v2443_v41, %v2317_v48  ;;  %vm1940_vm6 = vcmp.lt.s32.totalorder %v1812_v8, 1920  ;;  %v1687_v38 = vadd.s32 976, %v3674_v5  ;;  %v1815_v27 = vadd.s32 %v3676_v6, %v1685_v62 }
 0x1eb   : > { %v2705_v9 = vadd.f32 %v2704_v22, %v2578_v11  ;;  %v1686_v1 = vadd.s32 968, %v3674_v5  ;;  %v2582_v47 = vmul.f32 %v2321_v4, %v2321_v4  ;;  %v2583_v3 = vmul.f32 %v2322_v20, %v2322_v20 }
 0x1ec   : > { %v2445_v19 = vadd.f32 %v2444_v2, %v2318_v55  ;;  %vm1941_vm7 = vcmp.lt.s32.totalorder %v1813_v28, 1920  ;;  %v2584_v53 = vmul.f32 %v2323_v23, %v2323_v23  ;;  %vm1942_vm8 = vcmp.lt.s32.totalorder %v1814_v50, 1920 }
 0x1ed   : > { %v2706_v57 = vadd.f32 %v2705_v9, %v2579_v0  ;;  %v2324_v43 = vsel %vm1940_vm6, %v4702_v24, 0.0  ;;  %v1688_v29 = vadd.s32 984, %v3674_v5  ;;  %v1817_v15 = vadd.s32 %v3676_v6, %v1687_v38 }
 0x1ee   : > { %v2446_v31 = vadd.f32 %v2445_v19, %v2319_v18  ;;  %vm1943_vm9 = vcmp.lt.s32.totalorder %v1815_v27, 1920  ;;  %v1816_v49 = vadd.s32 %v3676_v6, %v1686_v1  ;;  %v2325_v30 = vsel %vm1941_vm7, %v4675_v26, 0.0 }
 0x1ef   : > { %v2707_v25 = vadd.f32 %v2706_v57, %v2580_v35  ;;  %v1689_v60 = vadd.s32 992, %v3674_v5  ;;  %v2326_v61 = vsel %vm1942_vm8, %v4695_v40, 0.0  ;;  %v2585_v48 = vmul.f32 %v2324_v43, %v2324_v43 }
 0x1f0   : > { %v2447_v45 = vadd.f32 %v2446_v31, %v2320_v39  ;;  %v2327_v24 = vsel %vm1943_vm9, %v4723_v21, 0.0  ;;  %v1818_v12 = vadd.s32 %v3676_v6, %v1688_v29  ;;  %v2586_v41 = vmul.f32 %v2325_v30, %v2325_v30 }
 0x1f1   : > { %v2708_v58 = vadd.f32 %v2707_v25, %v2581_v59  ;;  %vm1945_vm10 = vcmp.lt.s32.totalorder %v1817_v15, 1920  ;;  %vm1944_vm11 = vcmp.lt.s32.totalorder %v1816_v49, 1920  ;;  %v1819_v26 = vadd.s32 %v3676_v6, %v1689_v60 }
 0x1f2   : > { %v2448_v44 = vadd.f32 %v2447_v45, %v2321_v4  ;;  %v1690_v18 = vadd.s32 1000, %v3674_v5  ;;  %v2587_v34 = vmul.f32 %v2326_v61, %v2326_v61  ;;  %v2588_v10 = vmul.f32 %v2327_v24, %v2327_v24 }
 0x1f3   : > { %v2709_v33 = vadd.f32 %v2708_v58, %v2582_v47  ;;  %vm1946_vm12 = vcmp.lt.s32.totalorder %v1818_v12, 1920  ;;  %v1691_v2 = vadd.s32 1008, %v3674_v5  ;;  %v2329_v21 = vsel %vm1945_vm10, %v4716_v16, 0.0 }
 0x1f4   : > { %v2449_v7 = vadd.f32 %v2448_v44, %v2322_v20  ;;  %v2328_v22 = vsel %vm1944_vm11, %v4739_v36, 0.0  ;;  %v1692_v0 = vadd.s32 1016, %v3674_v5  ;;  %vm1947_vm13 = vcmp.lt.s32.totalorder %v1819_v26, 1920 }
 0x1f5   : > { %v2710_v37 = vadd.f32 %v2709_v33, %v2583_v3  ;;  %v1820_v9 = vadd.s32 %v3676_v6, %v1690_v18  ;;  %v2330_v19 = vsel %vm1946_vm12, %v4733_v63, 0.0  ;;  %v2589_v8 = vmul.f32 %v2328_v22, %v2328_v22 }
 0x1f6   : > { %v2450_v46 = vadd.f32 %v2449_v7, %v2323_v23  ;;  %v1821_v62 = vadd.s32 %v3676_v6, %v1691_v2  ;;  %v2590_v31 = vmul.f32 %v2329_v21, %v2329_v21  ;;  %v2331_v57 = vsel %vm1947_vm13, %v4761_v56, 0.0 }
 0x1f7   : > { %v2711_v55 = vadd.f32 %v2710_v37, %v2584_v53  ;;  %v1822_v36 = vadd.s32 %v3676_v6, %v1692_v0  ;;  %vm1948_vm14 = vcmp.lt.s32.totalorder %v1820_v9, 1920  ;;  %v2591_v5 = vmul.f32 %v2330_v19, %v2330_v19 }
 0x1f8   : > { %v2451_v42 = vadd.f32 %v2450_v46, %v2324_v43  ;;  %vm1949_vm15 = vcmp.lt.s32.totalorder %v1821_v62, 1920  ;;  %v2592_v50 = vmul.f32 %v2331_v57, %v2331_v57  ;;  %v2332_v63 = vsel %vm1948_vm14, %v4786_v51, 0.0 }
 0x1f9   : > { %v2712_v32 = vadd.f32 %v2711_v55, %v2585_v48  ;;  %vm1950_vm0 = vcmp.lt.s32.totalorder %v1822_v36, 1920  ;;  %v2333_v59 = vsel %vm1949_vm15, %v4750_v13, 0.0  ;;  %v2593_v38 = vmul.f32 %v2332_v63, %v2332_v63 }
 0x1fa   : > { %v2452_v17 = vadd.f32 %v2451_v42, %v2325_v30  ;;  %v2334_v27 = vsel %vm1950_vm0, %v4773_v54, 0.0  ;;  %v2594_v6 = vmul.f32 %v2333_v59, %v2333_v59  ;;  %vm2729_vm1 = vcmask 1040384  }
 0x1fb   : > { %v2713_v11 = vadd.f32 %v2712_v32, %v2586_v41  ;;  %v2595_v44 = vmul.f32 %v2334_v27, %v2334_v27 }
 0x1fc   : > { %v2453_v40 = vadd.f32 %v2452_v17, %v2326_v61 }
 0x1fd   : > { %v2714_v14 = vadd.f32 %v2713_v11, %v2587_v34 }
 0x1fe   : > { %v2454_v52 = vadd.f32 %v2453_v40, %v2327_v24 }
 0x1ff   : > { %v2715_v35 = vadd.f32 %v2714_v14, %v2588_v10 }
 0x200   : > { %v2455_v39 = vadd.f32 %v2454_v52, %v2328_v22 }
 0x201   : > { %v2716_v4 = vadd.f32 %v2715_v35, %v2589_v8 }
 0x202   : > { %v2456_v16 = vadd.f32 %v2455_v39, %v2329_v21 }
 0x203   : > { %v2717_v20 = vadd.f32 %v2716_v4, %v2590_v31 }
 0x204   : > { %v2457_v28 = vadd.f32 %v2456_v16, %v2330_v19 }
 0x205   : > { %v2718_v45 = vadd.f32 %v2717_v20, %v2591_v5 }
 0x206   : > { %v2458_v25 = vadd.f32 %v2457_v28, %v2331_v57 }
 0x207   : > { %v2719_v23 = vadd.f32 %v2718_v45, %v2592_v50 }
 0x208   : > { %v2459_v56 = vadd.f32 %v2458_v25, %v2332_v63 }
 0x209   : > { %v2720_v47 = vadd.f32 %v2719_v23, %v2593_v38 }
 0x20a   : > { %v2460_v1 = vadd.f32 %v2459_v56, %v2333_v59 }
 0x20b   : > { %v2721_v3 = vadd.f32 %v2720_v47, %v2594_v6 }
 0x20c   : > { %v2461_v58 = vadd.f32 %v2460_v1, %v2334_v27 }
 0x20d   : > { %v2722_v51 = vadd.f32 %v2721_v3, %v2595_v44 }
 0x20e   : > { %v2462_v53 = vrot.slane %v2461_v58, 4 }
 0x20f   : > { %v2723_v7 = vrot.slane %v2722_v51, 4 }
 0x210   : > { %v2463_v33 = vadd.f32 %v2462_v53, %v2461_v58 }
 0x211   : > { %v2724_v29 = vadd.f32 %v2723_v7, %v2722_v51 }
 0x212   : > { %v2464_v43 = vrot.slane %v2463_v33, 2 }
 0x213   : > { %v2725_v15 = vrot.slane %v2724_v29, 2 }
 0x214   : > { %v2465_v13 = vadd.f32 %v2464_v43, %v2463_v33 }
 0x215   : > { %v2726_v54 = vadd.f32 %v2725_v15, %v2724_v29 }
 0x216   : > { %v2466_v49 = vrot.slane %v2465_v13, 1 }
 0x217   : > { %v2727_v30 = vrot.slane %v2726_v54, 1 }
 0x218   : > { %v2467_v46 = vadd.f32 %v2466_v49, %v2465_v13 }
 0x219   : > { %v2728_v37 = vadd.f32 %v2727_v30, %v2726_v54 }
 0x21b   : > { %v2730_v60 = vsel %vm2729_vm1, %v2467_v46, %v2728_v37 }
 0x21c   : > { %2731 = vst [vmem:[%s202_s9] sm:$0x3] %v2730_v60 }
 0x21d   : > { %3395 = shalt.err (!%p3392_p9)
}
 0x21e   : > { %s3396_s20 = scalar_lea.hbm %s4921_s13, 32  ;;  %s3400_s30 = scalar_lea.hbm %s4968_s4, 64 }
 0x21f   : > { %p3397_p10 = scmp.ne.s32.totalorder %s4921_s13, %s3396_s20  ;;  %p3401_p13 = scmp.lt.u32.totalorder %s4921_s13, %s4968_s4 }
 0x220   : > { %p3402_p0 = scmp.lt.u32.totalorder %s3400_s30, %s3396_s20  ;;  %p3404_p2 = scmp.lt.u32.totalorder %s3396_s20, %s4921_s13 }
 0x221   : > { %p3398_p11 = pnand %p3397_p10, %p3517_p5 }
 0x222   : > { %p3403_p1 = por %p3402_p0, %p3401_p13 }
 0x223   : > { %p3399_p12 = pneg %p3398_p11 }
 0x224   : > { %p3405_p3 = por %p3404_p2, %p3403_p1 }
 0x226   : > { %p3406_p4 = pnand %p3405_p3, %p3399_p12 }
 0x228   : > { %3409 = shalt.err (!%p3406_p4)
}
 0x229   : > { %3221 = dma.vmem_to_hbm [thread:$0]  (%p3517_p5), %s4923_s10, 32, %s4921_s13, %s2738_s14  }
 0x22a PF: > { %p3231_p7 = scmp.ge.s32.totalorder %s3448_s18, 2  ;;  %s2779_s6 = sand.u32 1, %s3436_s15  }
 0x22b   : > { %s2780_s8 = scalar_lea.sflag [#allocation3], %s2779_s6 }
 0x22c   : > { %p3225_p8 = pnand %p3231_p7, %p3521_p6 }
 0x22e   : > { %3427 = dma.done.wait (!%p3225_p8), %s2780_s8, 16384  }
 0x22f   : > { %3429 = vsyncadd (!%p3225_p8), %s2780_s8, 4294950912  ;;  %s2789_s9 = scalar_lea.sflag [#allocation5], %s2779_s6 }
 0x230   : > { %3431 = dma.done.wait (!%p3225_p8), %s2789_s9, 32  }
 0x231   : > { %3433 = vsyncadd (!%p3225_p8), %s2789_s9, 4294967264  ;;  %p18_p5 = scmp.ge.s32.totalorder %s3504_s21, 4   ;;  %s4995_s15 = smov %s3440_s16 }
 0x232   : > { %s4996_s16 = smov %s3444_s17  ;;  %s4997_s17 = smov %s3515_s24 }
 0x233   : > { %s4998_s18 = smov %s3504_s21  ;;  %20 = sbr.rel (!%p18_p5) target bundleno = 5 (0x5), region = 84 }
 0x23a   :  { %2794 = vsyncpa [#allocation3], 1 }
 0x23b   :  { %2796 = vsyncpa [#allocation3 + $0x1], 1 }
 0x23c   :  { %2797 = vsyncpa [#allocation5], 1 }
 0x23d   :  { %2799 = vsyncpa [#allocation5 + $0x1], 1 }

</bundles_post_ra>
